<compile_context>
chip_gen: v5e
topology: v5e:2x2
jax: 0.10.0
libtpu: 0.0.40
codegen_flags: <defaults>
</compile_context>

<pallas_src>
from functools import partial

import jax
import jax.numpy as jnp
import numpy as np
from jax import lax
from jax.experimental import pallas as pl
from jax.experimental.pallas import tpu as pltpu

HIDDEN = 50          # true hidden width of NetWithDeriv
HIDDEN_PAD = 64      # zero-padded lane width used inside the kernel
ALPHA = 6.0


# --------------------------------- kernel ---------------------------------
def din_avd_kernel(s_ref,                      # SMEM (3,): [t, b3_beta, b3_gamma]
                   w1_ref, b1_ref,             # (1, 2*Hp)   [beta | gamma]
                   w2_ref,                     # (2*Hp, 2*Hp) block-diag(W2b^T, W2g^T)
                   b2_ref,                     # (1, 2*Hp)
                   w3b_ref, w3g_ref,           # (1, 2*Hp) masked W3 rows (beta / gamma lanes)
                   a_ref,                      # (TK, TN) tile of A (df = x @ A)
                   xk_ref,                     # (B, TK)  x slice along contraction
                   xj_ref, v_ref,              # (B, TN)  x, v slices along output cols
                   dx_ref, dv_ref,             # (B, TN) outputs
                   acc_ref):                   # (B, TN) f32 scratch (df accumulator)
    k = pl.program_id(1)
    nk = pl.num_programs(1)

    @pl.when(k == 0)
    def _init():
        acc_ref[...] = jnp.zeros_like(acc_ref)

    # Hot path: one MXU tile of df = x @ A.
    acc_ref[...] += jnp.dot(xk_ref[...], a_ref[...],
                            preferred_element_type=jnp.float32,
                            precision=lax.Precision.HIGHEST)

    @pl.when(k == nk - 1)
    def _finalize():
        t = s_ref[0]                                    # scalars (SMEM)
        b3b = s_ref[1]
        b3g = s_ref[2]

        # ---- beta & gamma MLPs + d beta/dt (cold path, once per column tile) ----
        w1 = w1_ref[...]                                # (1, 2*Hp)
        h1 = t * w1 + b1_ref[...]                       # layer 1 (both nets)
        e1 = jnp.exp(h1)                                # reused for ELU and ELU'
        a1 = jnp.where(h1 > 0, h1, e1 - 1.0)            # ELU
        g1 = jnp.minimum(e1, 1.0)                       # ELU'

        # Layer-2 dots against the block-diagonal RHS (forward + deriv chain).
        z_fwd = jnp.dot(a1, w2_ref[...],
                        preferred_element_type=jnp.float32,
                        precision=lax.Precision.HIGHEST)       # (1, 2*Hp)
        z_der = jnp.dot(w1 * g1, w2_ref[...],
                        preferred_element_type=jnp.float32,
                        precision=lax.Precision.HIGHEST)       # (1, 2*Hp)

        h2 = z_fwd + b2_ref[...]
        e2 = jnp.exp(h2)
        a2 = jnp.where(h2 > 0, h2, e2 - 1.0)
        g2 = jnp.minimum(e2, 1.0)

        w3b = w3b_ref[...]                              # W3_beta in beta lanes, 0 elsewhere
        w3g = w3g_ref[...]                              # W3_gamma in gamma lanes, 0 elsewhere
        beta = jnp.sum(a2 * w3b, axis=-1, keepdims=True) + b3b        # (1, 1)
        gamma = jnp.sum(a2 * w3g, axis=-1, keepdims=True) + b3g       # (1, 1)
        dbeta = jnp.sum(g2 * z_der * w3b, axis=-1, keepdims=True)     # (1, 1)

        # ---- combine ----
        df = acc_ref[...]
        coef = 1.0 - ALPHA / t                           # scalar path
        dx = -xj_ref[...] + v_ref[...] - beta * df
        dv = coef * dx + (dbeta - gamma) * df
        dx_ref[...] = dx
        dv_ref[...] = dv


# ------------------------------ host wrappers ------------------------------
def _pad_net(p, hp):
    """Zero-pad one NetWithDeriv's params from H=50 to hp lanes (exact)."""
    W1, b1, W2, b2, W3, b3 = [jnp.asarray(a, jnp.float32) for a in p]
    H = W1.shape[0]
    w1 = jnp.zeros((1, hp), jnp.float32).at[0, :H].set(W1[:, 0])
    b1p = jnp.zeros((1, hp), jnp.float32).at[0, :H].set(b1)
    w2T = jnp.zeros((hp, hp), jnp.float32).at[:H, :H].set(W2.T)
    b2p = jnp.zeros((1, hp), jnp.float32).at[0, :H].set(b2)
    w3 = jnp.zeros((1, hp), jnp.float32).at[0, :H].set(W3[0, :])
    return w1, b1p, w2T, b2p, w3, b3.reshape(())


def pack_din_avd_params(beta_params, gamma_params):
    """One-time packing (do this OUTSIDE the repeated forward call path)."""
    hp = HIDDEN_PAD
    wb = _pad_net(beta_params, hp)
    wg = _pad_net(gamma_params, hp)
    zeros = jnp.zeros((1, hp), jnp.float32)
    w2blk = jnp.zeros((2 * hp, 2 * hp), jnp.float32)
    w2blk = w2blk.at[:hp, :hp].set(wb[2]).at[hp:, hp:].set(wg[2])
    return {
        "w1bg": jnp.concatenate([wb[0], wg[0]], axis=1),   # (1, 2*hp)
        "b1bg": jnp.concatenate([wb[1], wg[1]], axis=1),
        "w2blk": w2blk,                                     # (2*hp, 2*hp)
        "b2bg": jnp.concatenate([wb[3], wg[3]], axis=1),
        "w3b": jnp.concatenate([wb[4], zeros], axis=1),     # beta lanes only
        "w3g": jnp.concatenate([zeros, wg[4]], axis=1),     # gamma lanes only
        "b3": jnp.stack([wb[5], wg[5]]),                    # (2,)
    }


@partial(jax.jit, static_argnames=("tn", "tk"))
def din_avd_forward(t, packed, A_contract, x, v, *, tn=512, tk=512):
    """DIN_AVD forward for a batch of states.

    x, v: (B, N).  A_contract: (N, N) laid out so that df = x @ A_contract
    reproduces gradFunc per row; the gradient matrix of a quadratic objective is
    symmetric, so A can be passed directly (no per-call host transpose).
    """
    f32 = jnp.float32
    x = x.astype(f32)
    v = v.astype(f32)
    A_contract = A_contract.astype(f32)
    B, N = x.shape
    hp2 = 2 * HIDDEN_PAD

    tn = min(tn, N)
    tk = min(tk, N)
    assert N % tn == 0 and N % tk == 0, "N must be divisible by tile sizes"
    nj, nk = N // tn, N // tk

    scalars = jnp.stack([jnp.asarray(t, f32).reshape(()),
                         packed["b3"][0], packed["b3"][1]])   # (3,) -> SMEM

    const = lambda j, k: (0, 0)
    in_specs = [
        pl.BlockSpec(memory_space=pltpu.MemorySpace.SMEM),     # scalars
        pl.BlockSpec((1, hp2), const),                         # w1bg
        pl.BlockSpec((1, hp2), const),                         # b1bg
        pl.BlockSpec((hp2, hp2), const),                       # w2blk
        pl.BlockSpec((1, hp2), const),                         # b2bg
        pl.BlockSpec((1, hp2), const),                         # w3b
        pl.BlockSpec((1, hp2), const),                         # w3g
        pl.BlockSpec((tk, tn), lambda j, k: (k, j)),           # A tile (streamed)
        pl.BlockSpec((B, tk), lambda j, k: (0, k)),            # x (contraction)
        pl.BlockSpec((B, tn), lambda j, k: (0, j)),            # x (output cols)
        pl.BlockSpec((B, tn), lambda j, k: (0, j)),            # v
    ]
    out_spec = pl.BlockSpec((B, tn), lambda j, k: (0, j))

    dx, dv = pl.pallas_call(
        din_avd_kernel,
        out_shape=(jax.ShapeDtypeStruct((B, N), f32),
                   jax.ShapeDtypeStruct((B, N), f32)),
        grid=(nj, nk),
        in_specs=in_specs,
        out_specs=(out_spec, out_spec),
        scratch_shapes=[pltpu.VMEM((B, tn), jnp.float32)],
        compiler_params=pltpu.CompilerParams(
            dimension_semantics=("parallel", "arbitrary")),
    )(scalars, packed["w1bg"], packed["b1bg"], packed["w2blk"],
      packed["b2bg"], packed["w3b"], packed["w3g"], A_contract, x, x, v)
    return dx, dv


# --------------------------- float64 numpy reference ---------------------------
def _din_avd_ref(t_scalar, pb, pg, A, x, v):
    def elu(z):
        return np.where(z > 0, z, np.exp(z) - 1.0)

    pb = [np.asarray(a, np.float64) for a in pb]
    pg = [np.asarray(a, np.float64) for a in pg]
    A64 = np.asarray(A, np.float64)
    x64 = np.asarray(x, np.float64)
    v64 = np.asarray(v, np.float64)
    t = float(t_scalar)

    def net_forward(p):
        W1, b1, W2, b2, W3, b3 = p
        h1 = t * W1[:, 0] + b1
        a1 = elu(h1)
        h2 = a1 @ W2.T + b2
        a2 = elu(h2)
        return float(a2 @ W3[0, :] + b3[0]), h1, h2

    def net_deriv(p, h1, h2):
        W1, _, W2, _, W3, _ = p
        d = W1[:, 0] * np.minimum(np.exp(h1), 1.0)
        d = W2 @ d
        d = np.minimum(np.exp(h2), 1.0) * d
        return float(W3[0, :] @ d)

    beta, h1b, h2b = net_forward(pb)
    gamma, _, _ = net_forward(pg)
    dbeta = net_deriv(pb, h1b, h2b)
    df = x64 @ A64.T                       # per row: gradFunc(x_row) = A @ x_row
    dx = -x64 + v64 - beta * df
    dv = (1.0 - ALPHA / t) * dx + (dbeta - gamma) * df
    return dx, dv


def _init_net(key, in_size=1, hidden=HIDDEN, out_size=1):
    ks = jax.random.split(key, 6)

    def u(k, shape, fan_in):
        bound = 1.0 / np.sqrt(fan_in)
        return jax.random.uniform(k, shape, jnp.float32, -bound, bound)

    W1 = u(ks[0], (hidden, in_size), in_size)
    b1 = u(ks[1], (hidden,), in_size)
    W2 = u(ks[2], (hidden, hidden), hidden)
    b2 = u(ks[3], (hidden,), hidden)
    W3 = u(ks[4], (out_size, hidden), hidden)
    b3 = u(ks[5], (out_size,), hidden)
    return (W1, b1, W2, b2, W3, b3)


if __name__ == "__main__":
    key = jax.random.PRNGKey(0)
    k_beta, k_gamma, k_A, k_x, k_v = jax.random.split(key, 5)

    N = 256      # small problem dimension; 128-lane tiles -> grid (2, 2)
    B = 8        # batch of independent (x, v) states sharing the same t
    beta_params = _init_net(k_beta)
    gamma_params = _init_net(k_gamma)

    # gradFunc(x) = A @ x with A symmetric PSD (gradient of a quadratic objective)
    M = jax.random.normal(k_A, (N, N), jnp.float32)
    A = (M @ M.T) / N + 0.1 * jnp.eye(N, dtype=jnp.float32)

    x = jax.random.normal(k_x, (B, N), jnp.float32)
    v = jax.random.normal(k_v, (B, N), jnp.float32)
    t = 7.5

    packed = pack_din_avd_params(beta_params, gamma_params)   # once, off hot path
    dx, dv = din_avd_forward(t, packed, A, x, v, tn=128, tk=128)
    jax.block_until_ready((dx, dv))

    dx_ref, dv_ref = _din_avd_ref(t, beta_params, gamma_params, A, x, v)
    assert dx.shape == (B, N) and dv.shape == (B, N)
    np.testing.assert_allclose(np.asarray(dx), dx_ref, rtol=1e-4, atol=3e-4)
    np.testing.assert_allclose(np.asarray(dv), dv_ref, rtol=1e-4, atol=3e-4)

    print("KERNEL_OK")
</pallas_src>

<mosaic_0001>
module attributes {stable_mosaic.version = 11 : i64} {
  func.func @din_avd_kernel(%arg0: i32, %arg1: i32, %arg2: memref<3xf32, #tpu.memory_space<smem>>, %arg3: memref<1x128xf32, #tpu.memory_space<vmem>>, %arg4: memref<1x128xf32, #tpu.memory_space<vmem>>, %arg5: memref<128x128xf32, #tpu.memory_space<vmem>>, %arg6: memref<1x128xf32, #tpu.memory_space<vmem>>, %arg7: memref<1x128xf32, #tpu.memory_space<vmem>>, %arg8: memref<1x128xf32, #tpu.memory_space<vmem>>, %arg9: memref<128x128xf32, #tpu.memory_space<vmem>>, %arg10: memref<8x128xf32, #tpu.memory_space<vmem>>, %arg11: memref<8x128xf32, #tpu.memory_space<vmem>>, %arg12: memref<8x128xf32, #tpu.memory_space<vmem>>, %arg13: memref<8x128xf32, #tpu.memory_space<vmem>>, %arg14: memref<8x128xf32, #tpu.memory_space<vmem>>, %arg15: memref<8x128xf32, #tpu.memory_space<vmem>>) attributes {dimension_semantics = [#tpu.dimension_semantics<parallel>, #tpu.dimension_semantics<arbitrary>], iteration_bounds = array<i64: 2, 2>, scalar_prefetch = 0 : i64, scratch_operands = 1 : i64, tpu.core_type = #tpu.core_type<tc>, window_params = [{transform_indices = @transform_0, window_bounds = array<i64: 3>}, {pipeline_mode = #tpu.pipeline_mode<synchronous>, transform_indices = @transform_1, window_bounds = array<i64: 1, 128>}, {pipeline_mode = #tpu.pipeline_mode<synchronous>, transform_indices = @transform_2, window_bounds = array<i64: 1, 128>}, {pipeline_mode = #tpu.pipeline_mode<synchronous>, transform_indices = @transform_3, window_bounds = array<i64: 128, 128>}, {pipeline_mode = #tpu.pipeline_mode<synchronous>, transform_indices = @transform_4, window_bounds = array<i64: 1, 128>}, {pipeline_mode = #tpu.pipeline_mode<synchronous>, transform_indices = @transform_5, window_bounds = array<i64: 1, 128>}, {pipeline_mode = #tpu.pipeline_mode<synchronous>, transform_indices = @transform_6, window_bounds = array<i64: 1, 128>}, {transform_indices = @transform_7, window_bounds = array<i64: 128, 128>}, {transform_indices = @transform_8, window_bounds = array<i64: 8, 128>}, {transform_indices = @transform_9, window_bounds = array<i64: 8, 128>}, {transform_indices = @transform_10, window_bounds = array<i64: 8, 128>}, {transform_indices = @transform_11, window_bounds = array<i64: 8, 128>}, {transform_indices = @transform_12, window_bounds = array<i64: 8, 128>}]} {
    %c0_i32 = arith.constant 0 : i32
    %0 = arith.cmpi eq, %arg1, %c0_i32 : i32
    %1 = arith.extui %0 : i1 to i32
    %c0_i32_0 = arith.constant 0 : i32
    %2 = arith.cmpi ne, %1, %c0_i32_0 : i32
    scf.if %2 {
      %cst_9 = arith.constant 0.000000e+00 : f32
      %12 = vector.broadcast %cst_9 : f32 to vector<8x128xf32>
      %c0_10 = arith.constant 0 : index
      %c0_11 = arith.constant 0 : index
      %13 = vector.load %arg15[%c0_10, %c0_11] : memref<8x128xf32, #tpu.memory_space<vmem>>, vector<8x128xf32>
      tpu.vector_store %arg15[%c0_10, %c0_11], %12 {strides = array<i32>} : memref<8x128xf32, #tpu.memory_space<vmem>>, vector<8x128xf32>,
    } else {
    }
    %c0 = arith.constant 0 : index
    %c0_1 = arith.constant 0 : index
    %3 = vector.load %arg15[%c0, %c0_1] : memref<8x128xf32, #tpu.memory_space<vmem>>, vector<8x128xf32>
    %c0_2 = arith.constant 0 : index
    %c0_3 = arith.constant 0 : index
    %4 = vector.load %arg10[%c0_2, %c0_3] : memref<8x128xf32, #tpu.memory_space<vmem>>, vector<8x128xf32>
    %c0_4 = arith.constant 0 : index
    %c0_5 = arith.constant 0 : index
    %5 = vector.load %arg9[%c0_4, %c0_5] : memref<128x128xf32, #tpu.memory_space<vmem>>, vector<128x128xf32>
    %cst = arith.constant dense<0.000000e+00> : vector<8x128xf32>
    %6 = tpu.matmul %4, %5, %cst {dimension_numbers = #tpu.dot_dimension_numbers<[1], [0], [0], [1], [0, 0, 1, 1], [], []>, precision = #tpu.contract_precision<fp32>} : vector<8x128xf32>, vector<128x128xf32>, vector<8x128xf32> -> vector<8x128xf32>
    %7 = arith.addf %3, %6 : vector<8x128xf32>
    %c0_6 = arith.constant 0 : index
    %c0_7 = arith.constant 0 : index
    %8 = vector.load %arg15[%c0_6, %c0_7] : memref<8x128xf32, #tpu.memory_space<vmem>>, vector<8x128xf32>
    tpu.vector_store %arg15[%c0_6, %c0_7], %7 {strides = array<i32>} : memref<8x128xf32, #tpu.memory_space<vmem>>, vector<8x128xf32>,
    %c1_i32 = arith.constant 1 : i32
    %9 = arith.cmpi eq, %arg1, %c1_i32 : i32
    %10 = arith.extui %9 : i1 to i32
    %c0_i32_8 = arith.constant 0 : i32
    %11 = arith.cmpi ne, %10, %c0_i32_8 : i32
    scf.if %11 {
      %c0_9 = arith.constant 0 : index
      %12 = memref.load %arg2[%c0_9] : memref<3xf32, #tpu.memory_space<smem>>
      %c1 = arith.constant 1 : index
      %13 = memref.load %arg2[%c1] : memref<3xf32, #tpu.memory_space<smem>>
      %c2 = arith.constant 2 : index
      %14 = memref.load %arg2[%c2] : memref<3xf32, #tpu.memory_space<smem>>
      %c0_10 = arith.constant 0 : index
      %c0_11 = arith.constant 0 : index
      %15 = vector.load %arg3[%c0_10, %c0_11] : memref<1x128xf32, #tpu.memory_space<vmem>>, vector<1x128xf32>
      %16 = vector.broadcast %12 : f32 to vector<1x128xf32>
      %17 = arith.mulf %16, %15 : vector<1x128xf32>
      %c0_12 = arith.constant 0 : index
      %c0_13 = arith.constant 0 : index
      %18 = vector.load %arg4[%c0_12, %c0_13] : memref<1x128xf32, #tpu.memory_space<vmem>>, vector<1x128xf32>
      %19 = arith.addf %17, %18 : vector<1x128xf32>
      %20 = math.exp %19 : vector<1x128xf32>
      %cst_14 = arith.constant 0.000000e+00 : f32
      %21 = vector.broadcast %cst_14 : f32 to vector<1x128xf32>
      %22 = arith.cmpf ogt, %19, %21 : vector<1x128xf32>
      %cst_15 = arith.constant 1.000000e+00 : f32
      %23 = vector.broadcast %cst_15 : f32 to vector<1x128xf32>
      %24 = arith.subf %20, %23 : vector<1x128xf32>
      %25 = arith.select %22, %19, %24 : vector<1x128xi1>, vector<1x128xf32>
      %cst_16 = arith.constant 1.000000e+00 : f32
      %26 = vector.broadcast %cst_16 : f32 to vector<1x128xf32>
      %27 = arith.minimumf %20, %26 : vector<1x128xf32>
      %c0_17 = arith.constant 0 : index
      %c0_18 = arith.constant 0 : index
      %28 = vector.load %arg5[%c0_17, %c0_18] : memref<128x128xf32, #tpu.memory_space<vmem>>, vector<128x128xf32>
      %cst_19 = arith.constant dense<0.000000e+00> : vector<1x128xf32>
      %29 = tpu.matmul %25, %28, %cst_19 {dimension_numbers = #tpu.dot_dimension_numbers<[1], [0], [0], [1], [0, 0, 1, 1], [], []>, precision = #tpu.contract_precision<fp32>} : vector<1x128xf32>, vector<128x128xf32>, vector<1x128xf32> -> vector<1x128xf32>
      %30 = arith.mulf %15, %27 : vector<1x128xf32>
      %c0_20 = arith.constant 0 : index
      %c0_21 = arith.constant 0 : index
      %31 = vector.load %arg5[%c0_20, %c0_21] : memref<128x128xf32, #tpu.memory_space<vmem>>, vector<128x128xf32>
      %cst_22 = arith.constant dense<0.000000e+00> : vector<1x128xf32>
      %32 = tpu.matmul %30, %31, %cst_22 {dimension_numbers = #tpu.dot_dimension_numbers<[1], [0], [0], [1], [0, 0, 1, 1], [], []>, precision = #tpu.contract_precision<fp32>} : vector<1x128xf32>, vector<128x128xf32>, vector<1x128xf32> -> vector<1x128xf32>
      %c0_23 = arith.constant 0 : index
      %c0_24 = arith.constant 0 : index
      %33 = vector.load %arg6[%c0_23, %c0_24] : memref<1x128xf32, #tpu.memory_space<vmem>>, vector<1x128xf32>
      %34 = arith.addf %29, %33 : vector<1x128xf32>
      %35 = math.exp %34 : vector<1x128xf32>
      %cst_25 = arith.constant 0.000000e+00 : f32
      %36 = vector.broadcast %cst_25 : f32 to vector<1x128xf32>
      %37 = arith.cmpf ogt, %34, %36 : vector<1x128xf32>
      %cst_26 = arith.constant 1.000000e+00 : f32
      %38 = vector.broadcast %cst_26 : f32 to vector<1x128xf32>
      %39 = arith.subf %35, %38 : vector<1x128xf32>
      %40 = arith.select %37, %34, %39 : vector<1x128xi1>, vector<1x128xf32>
      %cst_27 = arith.constant 1.000000e+00 : f32
      %41 = vector.broadcast %cst_27 : f32 to vector<1x128xf32>
      %42 = arith.minimumf %35, %41 : vector<1x128xf32>
      %c0_28 = arith.constant 0 : index
      %c0_29 = arith.constant 0 : index
      %43 = vector.load %arg7[%c0_28, %c0_29] : memref<1x128xf32, #tpu.memory_space<vmem>>, vector<1x128xf32>
      %c0_30 = arith.constant 0 : index
      %c0_31 = arith.constant 0 : index
      %44 = vector.load %arg8[%c0_30, %c0_31] : memref<1x128xf32, #tpu.memory_space<vmem>>, vector<1x128xf32>
      %45 = arith.mulf %40, %43 : vector<1x128xf32>
      %cst_32 = arith.constant dense<0.000000e+00> : vector<1xf32>
      %46 = vector.multi_reduction <add>, %45, %cst_32 [1] : vector<1x128xf32> to vector<1xf32>
      %47 = vector.shape_cast %46 : vector<1xf32> to vector<1x1xf32>
      %48 = vector.broadcast %13 : f32 to vector<1x1xf32>
      %49 = arith.addf %47, %48 : vector<1x1xf32>
      %50 = arith.mulf %40, %44 : vector<1x128xf32>
      %cst_33 = arith.constant dense<0.000000e+00> : vector<1xf32>
      %51 = vector.multi_reduction <add>, %50, %cst_33 [1] : vector<1x128xf32> to vector<1xf32>
      %52 = vector.shape_cast %51 : vector<1xf32> to vector<1x1xf32>
      %53 = vector.broadcast %14 : f32 to vector<1x1xf32>
      %54 = arith.addf %52, %53 : vector<1x1xf32>
      %55 = arith.mulf %42, %32 : vector<1x128xf32>
      %56 = arith.mulf %55, %43 : vector<1x128xf32>
      %cst_34 = arith.constant dense<0.000000e+00> : vector<1xf32>
      %57 = vector.multi_reduction <add>, %56, %cst_34 [1] : vector<1x128xf32> to vector<1xf32>
      %58 = vector.shape_cast %57 : vector<1xf32> to vector<1x1xf32>
      %c0_35 = arith.constant 0 : index
      %c0_36 = arith.constant 0 : index
      %59 = vector.load %arg15[%c0_35, %c0_36] : memref<8x128xf32, #tpu.memory_space<vmem>>, vector<8x128xf32>
      %cst_37 = arith.constant 6.000000e+00 : f32
      %60 = arith.divf %cst_37, %12 : f32
      %cst_38 = arith.constant 1.000000e+00 : f32
      %61 = arith.subf %cst_38, %60 : f32
      %c0_39 = arith.constant 0 : index
      %c0_40 = arith.constant 0 : index
      %62 = vector.load %arg11[%c0_39, %c0_40] : memref<8x128xf32, #tpu.memory_space<vmem>>, vector<8x128xf32>
      %cst_41 = arith.constant 0.000000e+00 : f32
      %63 = vector.broadcast %cst_41 : f32 to vector<8x128xf32>
      %64 = arith.subf %63, %62 : vector<8x128xf32>
      %c0_42 = arith.constant 0 : index
      %c0_43 = arith.constant 0 : index
      %65 = vector.load %arg12[%c0_42, %c0_43] : memref<8x128xf32, #tpu.memory_space<vmem>>, vector<8x128xf32>
      %66 = arith.addf %64, %65 : vector<8x128xf32>
      %67 = vector.broadcast %49 : vector<1x1xf32> to vector<8x128xf32>
      %68 = arith.mulf %67, %59 : vector<8x128xf32>
      %69 = arith.subf %66, %68 : vector<8x128xf32>
      %70 = vector.broadcast %61 : f32 to vector<8x128xf32>
      %71 = arith.mulf %70, %69 : vector<8x128xf32>
      %72 = arith.subf %58, %54 : vector<1x1xf32>
      %73 = vector.broadcast %72 : vector<1x1xf32> to vector<8x128xf32>
      %74 = arith.mulf %73, %59 : vector<8x128xf32>
      %75 = arith.addf %71, %74 : vector<8x128xf32>
      %c0_44 = arith.constant 0 : index
      %c0_45 = arith.constant 0 : index
      %76 = vector.load %arg13[%c0_44, %c0_45] : memref<8x128xf32, #tpu.memory_space<vmem>>, vector<8x128xf32>
      tpu.vector_store %arg13[%c0_44, %c0_45], %69 {strides = array<i32>} : memref<8x128xf32, #tpu.memory_space<vmem>>, vector<8x128xf32>,
      %c0_46 = arith.constant 0 : index
      %c0_47 = arith.constant 0 : index
      %77 = vector.load %arg14[%c0_46, %c0_47] : memref<8x128xf32, #tpu.memory_space<vmem>>, vector<8x128xf32>
      tpu.vector_store %arg14[%c0_46, %c0_47], %75 {strides = array<i32>} : memref<8x128xf32, #tpu.memory_space<vmem>>, vector<8x128xf32>,
    } else {
    }
    return
  }
  func.func @transform_0(%arg0: i32, %arg1: i32) -> i32 {
    %c0_i32 = arith.constant 0 : i32
    %c0_i32_0 = arith.constant 0 : i32
    return %c0_i32 : i32
  }
  func.func @transform_1(%arg0: i32, %arg1: i32) -> (i32, i32) {
    %c0_i32 = arith.constant 0 : i32
    %c0_i32_0 = arith.constant 0 : i32
    %c0_i32_1 = arith.constant 0 : i32
    return %c0_i32, %c0_i32_0 : i32, i32
  }
  func.func @transform_2(%arg0: i32, %arg1: i32) -> (i32, i32) {
    %c0_i32 = arith.constant 0 : i32
    %c0_i32_0 = arith.constant 0 : i32
    %c0_i32_1 = arith.constant 0 : i32
    return %c0_i32, %c0_i32_0 : i32, i32
  }
  func.func @transform_3(%arg0: i32, %arg1: i32) -> (i32, i32) {
    %c0_i32 = arith.constant 0 : i32
    %c0_i32_0 = arith.constant 0 : i32
    %c0_i32_1 = arith.constant 0 : i32
    return %c0_i32, %c0_i32_0 : i32, i32
  }
  func.func @transform_4(%arg0: i32, %arg1: i32) -> (i32, i32) {
    %c0_i32 = arith.constant 0 : i32
    %c0_i32_0 = arith.constant 0 : i32
    %c0_i32_1 = arith.constant 0 : i32
    return %c0_i32, %c0_i32_0 : i32, i32
  }
  func.func @transform_5(%arg0: i32, %arg1: i32) -> (i32, i32) {
    %c0_i32 = arith.constant 0 : i32
    %c0_i32_0 = arith.constant 0 : i32
    %c0_i32_1 = arith.constant 0 : i32
    return %c0_i32, %c0_i32_0 : i32, i32
  }
  func.func @transform_6(%arg0: i32, %arg1: i32) -> (i32, i32) {
    %c0_i32 = arith.constant 0 : i32
    %c0_i32_0 = arith.constant 0 : i32
    %c0_i32_1 = arith.constant 0 : i32
    return %c0_i32, %c0_i32_0 : i32, i32
  }
  func.func @transform_7(%arg0: i32, %arg1: i32) -> (i32, i32) {
    %c0_i32 = arith.constant 0 : i32
    return %arg1, %arg0 : i32, i32
  }
  func.func @transform_8(%arg0: i32, %arg1: i32) -> (i32, i32) {
    %c0_i32 = arith.constant 0 : i32
    %c0_i32_0 = arith.constant 0 : i32
    return %c0_i32, %arg1 : i32, i32
  }
  func.func @transform_9(%arg0: i32, %arg1: i32) -> (i32, i32) {
    %c0_i32 = arith.constant 0 : i32
    %c0_i32_0 = arith.constant 0 : i32
    return %c0_i32, %arg0 : i32, i32
  }
  func.func @transform_10(%arg0: i32, %arg1: i32) -> (i32, i32) {
    %c0_i32 = arith.constant 0 : i32
    %c0_i32_0 = arith.constant 0 : i32
    return %c0_i32, %arg0 : i32, i32
  }
  func.func @transform_11(%arg0: i32, %arg1: i32) -> (i32, i32) {
    %c0_i32 = arith.constant 0 : i32
    %c0_i32_0 = arith.constant 0 : i32
    return %c0_i32, %arg0 : i32, i32
  }
  func.func @transform_12(%arg0: i32, %arg1: i32) -> (i32, i32) {
    %c0_i32 = arith.constant 0 : i32
    %c0_i32_0 = arith.constant 0 : i32
    return %c0_i32, %arg0 : i32, i32
  }
}

</mosaic_0001>

<bundles_post_ra>
// kernel: din_avd_forward.1
= control target key start
LH: loop header
LB: loop body
LE: loop exit
PB: predicated region body
PF: predicated region fallthrough
CT: control target
= control target key end

     0   :  { %s3710_s0 = inlined_call_operand.vmem [shape: f32[3], index: 0, kind: input, shape index: {}]   ;;  %s3711_s1 = inlined_call_operand.vmem [shape: f32[1,128], index: 1, kind: input, shape index: {}]   ;;  %s3712_s2 = inlined_call_operand.vmem [shape: f32[1,128], index: 2, kind: input, shape index: {}]   ;;  %s3713_s3 = inlined_call_operand.hbm [shape: f32[128,128], index: 3, kind: input, shape index: {}]   ;;  %s3714_s4 = inlined_call_operand.vmem [shape: f32[1,128], index: 4, kind: input, shape index: {}]   ;;  %s3715_s5 = inlined_call_operand.vmem [shape: f32[1,128], index: 5, kind: input, shape index: {}]   ;;  %s3716_s6 = inlined_call_operand.vmem [shape: f32[1,128], index: 6, kind: input, shape index: {}]   ;;  %s3717_s7 = inlined_call_operand.hbm [shape: f32[256,256], index: 7, kind: input, shape index: {}]   ;;  %s3718_s8 = inlined_call_operand.hbm [shape: f32[8,256], index: 8, kind: input, shape index: {}, may-alias: {8,9}]   ;;  %s3719_s9 = inlined_call_operand.hbm [shape: f32[8,256], index: 9, kind: input, shape index: {}, may-alias: {8,9}]   ;;  %s3720_s10 = inlined_call_operand.hbm [shape: f32[8,256], index: 10, kind: input, shape index: {}]   ;;  %s3721_s11 = inlined_call_operand.hbm [shape: f32[8,256], index: 11, kind: output, shape index: {0}]   ;;  %s3722_s12 = inlined_call_operand.hbm [shape: f32[8,256], index: 12, kind: output, shape index: {1}]  }
   0x1   :  { %3743 = sst [smem:[#allocation41_spill]] %s3710_s0 }
   0x2   :  { %3744 = sst [smem:[#allocation42_spill]] %s3711_s1 }
   0x3   :  { %3745 = sst [smem:[#allocation43_spill]] %s3712_s2 }
   0x4   :  { %3746 = sst [smem:[#allocation44_spill]] %s3713_s3 }
   0x5   :  { %3747 = sst [smem:[#allocation45_spill]] %s3714_s4 }
   0x6   :  { %3748 = sst [smem:[#allocation46_spill]] %s3715_s5 }
   0x7   :  { %3749 = sst [smem:[#allocation47_spill]] %s3716_s6 }
   0x8   :  { %3750 = sst [smem:[#allocation48_spill]] %s3717_s7 }
   0x9   :  { %3751 = sst [smem:[#allocation49_spill]] %s3718_s8 }
   0xa   :  { %3752 = sst [smem:[#allocation50_spill]] %s3719_s9 }
   0xb   :  { %3753 = sst [smem:[#allocation51_spill]] %s3720_s10 }
   0xc   :  { %3754 = sst [smem:[#allocation52_spill]] %s3721_s11 }
   0xd   :  { %3755 = sst [smem:[#allocation53_spill]] %s3722_s12 }
   0xe   :  { %18 = vsyncpa [#allocation6], 0 }
   0xf   :  { %19 = vsyncpa [#allocation4], 0 }
  0x10   :  { %20 = vsyncpa [#allocation9], 0 }
  0x11   :  { %22 = vsyncpa [#allocation9 + $0x1], 0 }
  0x12   :  { %23 = vsyncpa [#allocation12], 0 }
  0x13   :  { %25 = vsyncpa [#allocation12 + $0x1], 0 }
  0x14   :  { %26 = vsyncpa [#allocation5], 0 }
  0x15   :  { %28 = vsyncpa [#allocation5 + $0x1], 0 }
  0x16   :  { %29 = vsyncpa [#allocation16], 0 }
  0x17   :  { %31 = vsyncpa [#allocation16 + $0x1], 0  ;;  %s2635_s21 = smov 0   ;;  %s2637_s22 = smov 0  }
  0x18   :  { %s2639_s23 = smov 0   ;;  %s2641_s24 = smov 0  }
  0x19   :  { %s2643_s25 = smov 0   ;;  %s2645_s26 = smov 0  }
  0x1a   :  { %s2647_s27 = smov 0   ;;  %s2649_s28 = smov 0  }
  0x1b   :  { %s2651_s29 = smov 0   ;;  %s2653_s30 = smov 0  }
  0x1c   :  { %s2655_s13 = smov 0   ;;  %s2657_s14 = smov 0  }
  0x1d   :  { %s2659_s15 = smov 0   ;;  %s2661_s16 = smov 0  }
  0x1e LB: > { %3756 = sst [smem:[#allocation24_spill]] %s2542_s29  ;;  %s3725_s17 = sadd.s32 1, %s2554_s14  ;;  %s2562_s16 = sphi %s2661_s16, %s37_s16   ;;  %s2558_s15 = sphi %s2659_s15, %s3821_s15   ;;  %s2554_s14 = sphi %s2657_s14, %s3831_s14   ;;  %s2550_s13 = sphi %s2655_s13, %s3819_s13   ;;  %s2546_s30 = sphi %s2653_s30, %s3830_s30   ;;  %s2542_s29 = sphi %s2651_s29, %s3818_s29   ;;  %s2538_s28 = sphi %s2649_s28, %s3829_s28   ;;  %s2534_s27 = sphi %s2647_s27, %s3828_s27   ;;  %s2530_s26 = sphi %s2645_s26, %s3827_s26   ;;  %s2526_s25 = sphi %s2643_s25, %s3826_s25   ;;  %s2522_s24 = sphi %s2641_s24, %s3825_s24   ;;  %s2518_s23 = sphi %s2639_s23, %s3824_s23   ;;  %s2514_s22 = sphi %s2637_s22, %s3823_s22   ;;  %s2510_s21 = sphi %s2635_s21, %s3822_s21  }
  0x1f   : > { %3757 = sst [smem:[#allocation25_spill]] %s2546_s30  ;;  %p2709_p0 = scmp.ge.s32.totalorder %s3725_s17, 2 }
  0x20   : > { %3758 = sst [smem:[#allocation26_spill]] %s2550_s13  ;;  %p212_p1 = scmp.ne.s32.totalorder %s2542_s29, %s2538_s28 }
  0x21   : > { %3759 = sst [smem:[#allocation27_spill]] %s2558_s15  ;;  %p213_p2 = scmp.eq.s32.totalorder %s2562_s16, 0 }
  0x22   : > { %p3734_p4 = scmp.lt.s32.totalorder %s2562_s16, 4  ;;  %s413_s12 = sand.u32 1, %s2542_s29  }
  0x23   : > { %p214_p3 = por %p213_p2, %p212_p1  ;;  %s1992_s11 = sshll.u32 %s413_s12, 7 }
  0x24   : > { %s2023_s13 = sshll.u32 %s2554_s14, 5  ;;  %s415_s18 = scalar_lea.vmem [#allocation8], %s1992_s11 }
  0x25   : > { %s420_s6 = sadd.s32 %s2558_s15, %s2023_s13  ;;  %s425_s17 = sshll.u32 %s415_s18, 4  ;;  %s426_s17 = int_to_ptr.vmem [resolvable:$true] %s425_s17 }
  0x26   : > { %s1995_s5 = sshll.u32 %s420_s6, 3  ;;  %s3761_s7 = sld [smem:[#allocation48_spill]] }
  0x27   : > { %p2054_p5 = pnand %p3734_p4, %p214_p3  ;;  %s3762_s11 = sand.u32 1, %s2562_s16  }
  0x28   : > { %s2730_s13 = scalar_lea.sflag [#allocation9], %s3762_s11  ;;  %s2564_s6 = smov 256  }
  0x29   : > { %s3726_s18 = smov 128   ;;  %s3727_s1 = smov 8  }
  0x2a   : > { %s2736_s2 = sadd.s32 4294967295, %s2562_s16   ;;  %s1987_s4 = sadd.s32 4294967294, %s2562_s16  }
  0x2b   : > { %s257_s11 = sadd.s32 1, %s2518_s23  ;;  %p264_p6 = scmp.ne.s32.totalorder %s2518_s23, %s2514_s22 }
  0x2c   : > { %s422_s20 = scalar_lea.hbm %s3761_s7, %s1995_s5  ;;  %s3763_s5 = sadd.s32 1, %s2554_s14 }
  0x2d   : > { %s423_s12 = sshll.u32 %s422_s20, 4  ;;  %s3833_s5 = smov (%p2709_p0, %s3763_s5), 0  ;;  %s424_s12 = int_to_ptr.hbm [resolvable:$true] %s423_s12 }
  0x2e   : > { %2056 = dma.hbm_to_vmem [thread:$0]  (!%p2054_p5), %s424_s12, 2048, %s426_s17, %s2730_s13, %s2564_s6, %s3726_s18, %s3727_s1  }
  0x2f   : > { %3764 = sst [smem:[#allocation28_spill]] %s3833_s5  ;;  %s49_s20 = sadd.s32 1, %s2558_s15 }
  0x30   : > { %s3835_s20 = smov (!%p2709_p0, %s49_s20), %s2558_s15  ;;  %s2752_s17 = ssub.s32 %s2554_s14, %s3833_s5 }
  0x31   : > { %p51_p7 = scmp.ge.s32.totalorder %s3835_s20, 2  ;;  %p270_p8 = scmp.ne.s32.totalorder %s2514_s22, %s2510_s21 }
  0x32   : > { %p2760_p9 = por %p264_p6, %p213_p2  ;;  %p320_p10 = scmp.eq.s32.totalorder %s2736_s2, 3 }
  0x33   : > { %s3837_s20 = smov (%p51_p7, %s3835_s20), 0  ;;  %p326_p12 = scmp.eq.s32.totalorder %s1987_s4, 3 }
  0x34   : > { %3766 = sst [smem:[#allocation29_spill]] %s3837_s20  ;;  %p2767_p11 = por %p320_p10, %p264_p6 }
  0x35   : > { %s201_s6 = ssub.s32 %s2558_s15, %s3837_s20  ;;  %p2777_p1 = por %p326_p12, %p270_p8 }
  0x36   : > { %s3767_s19 = scalar_select %p2767_p11, 1, 0 }
  0x37   : > { %s202_s18 = sor.u32 %s201_s6, %s2752_s17  ;;  %p255_p13 = scmp.eq.s32.totalorder %s201_s6, 0 }
  0x38   : > { %3768 = sst [smem:[#allocation30_spill]] %s3767_s19  ;;  %p203_p0 = scmp.eq.s32.totalorder %s202_s18, 0 }
  0x39   : > { %s3769_s1 = scalar_select %p2777_p1, 1, 0 }
  0x3a   : > { %s2782_s7 = scalar_select %p255_p13, %s2518_s23, %s257_s11  }
  0x3b   : > { %3770 = sst [smem:[#allocation31_spill]] %s3769_s1  ;;  %s3772_s5 = sadd.s32 1, %s2542_s29 }
  0x3c   : > { %3771 = sst [smem:[#allocation32_spill]] %s2782_s7  ;;  %s456_s4 = sand.u32 1, %s2518_s23  }
  0x3d   : > { %s2787_s19 = scalar_select %p203_p0, %s2542_s29, %s3772_s5  }
  0x3e   : > { %s2790_s20 = sshll.u32 %s456_s4, 3  ;;  %s1999_s18 = sshll.u32 %s2558_s15, 3 }
  0x3f   : > { %3773 = sst [smem:[#allocation33_spill]] %s2787_s19  ;;  %s458_s1 = scalar_lea.vmem [#allocation11], %s2790_s20 }
  0x40   : > { %s3774_s9 = sld [smem:[#allocation50_spill]]  ;;  %s466_s8 = sshll.u32 %s458_s1, 4  ;;  %s467_s8 = int_to_ptr.vmem [resolvable:$true] %s466_s8 }
  0x41   : > { %p2801_p3 = pnand %p3734_p4, %p2760_p9  ;;  %s3776_s10 = sld [smem:[#allocation51_spill]] }
  0x42   : > { %s3777_s6 = sand.u32 1, %s2562_s16   ;;  %p218_p5 = scmp.ne.s32.totalorder %s2538_s28, %s2534_s27 }
  0x43   : > { %p219_p6 = scmp.eq.s32.totalorder %s2736_s2, 0  ;;  %p1988_p7 = scmp.ge.s32.totalorder %s2562_s16, 1 }
  0x44   : > { %p359_p9 = scmp.lt.s32.totalorder %s2562_s16, 5  ;;  %s3781_s0 = sld [smem:[#allocation41_spill]] }
  0x45   : > { %p2824_p10 = por %p219_p6, %p218_p5  ;;  %p2833_p12 = por %p270_p8, %p219_p6 }
  0x46   : > { %s462_s11 = scalar_lea.hbm %s3774_s9, %s1999_s18  ;;  %s2812_s9 = scalar_lea.sflag [#allocation12], %s3777_s6 }
  0x47   : > { %s464_s7 = sshll.u32 %s462_s11, 4  ;;  %s2808_s30 = scalar_lea.hbm %s3776_s10, %s1999_s18  ;;  %s465_s7 = int_to_ptr.hbm [resolvable:$true] %s464_s7 }
  0x48   : > { %2062 = dma.hbm_to_vmem [thread:$0]  (!%p2801_p3), %s465_s7, 128, %s467_s8, %s2812_s9  }
  0x49   : > { %p2837_p13 = pnand %p1988_p7, %p359_p9  ;;  %s3782_s3 = sld [smem:[#allocation44_spill]] }
  0x4a   : > { %s371_s12 = sshll.u32 %s3781_s0, 4  ;;  %s2567_s6 = smov [#allocation7]   ;;  %s372_s12 = int_to_ptr.vmem [resolvable:$true] %s371_s12 }
  0x4b   : > { %p2046_p8 = pneg %p2837_p13  ;;  %s388_s8 = sshll.u32 %s2567_s6, 4  ;;  %s389_s8 = int_to_ptr.vmem [resolvable:$true] %s388_s8 }
  0x4c   : > { %s2568_s27 = smov [#allocation3]   ;;  %s3783_s0 = smov 8  }
  0x4d   : > { %p2047_p0 = pnand %p2046_p8, %p219_p6  ;;  %s3784_s10 = smov 128  }
  0x4e   : > { %p229_p5 = scmp.eq.s32.totalorder %s2752_s17, 0  ;;  %s231_s19 = sadd.s32 1, %s2530_s26 }
  0x4f   : > { %s386_s4 = sshll.u32 %s3782_s3, 4  ;;  %p238_p7 = scmp.ne.s32.totalorder %s2530_s26, %s2526_s25  ;;  %s387_s4 = int_to_ptr.hbm [resolvable:$true] %s386_s4 }
  0x50   : > { %2049 = dma.vmem_to_smem (!%p2047_p0), %s372_s12, 16, %s2568_s27, [#allocation6]  }
  0x51   : > { %2052 = dma.hbm_to_vmem [thread:$0]  (!%p2047_p0), %s387_s4, 2048, %s389_s8, [#allocation4], %s3784_s10, %s3784_s10, %s3783_s0  }
  0x52   : > { %p244_p9 = scmp.ne.s32.totalorder %s2526_s25, %s2522_s24  ;;  %p240_p8 = por %p238_p7, %p213_p2 }
  0x53   : > { %s2861_s18 = scalar_select %p229_p5, %s2530_s26, %s231_s19  }
  0x54   : > { %p2867_p4 = por %p244_p9, %p219_p6  ;;  %s437_s12 = sand.u32 1, %s2530_s26  }
  0x55   : > { %3785 = sst [smem:[#allocation34_spill]] %s2861_s18  ;;  %s1997_s0 = sshll.u32 %s2554_s14, 3 }
  0x56   : > { %s1996_s10 = sshll.u32 %s437_s12, 3  ;;  %s3787_s6 = sld [smem:[#allocation49_spill]] }
  0x57   : > { %s439_s19 = scalar_lea.vmem [#allocation10], %s1996_s10  ;;  %p3788_p2 = scmp.lt.s32.totalorder %s2562_s16, 4 }
  0x58   : > { %s447_s27 = sshll.u32 %s439_s19, 4  ;;  %s483_s3 = sshll.u32 %s2808_s30, 4  ;;  %s448_s27 = int_to_ptr.vmem [resolvable:$true] %s447_s27  ;;  %s484_s3 = int_to_ptr.hbm [resolvable:$true] %s483_s3 }
  0x59   : > { %p2057_p0 = pnand %p3788_p2, %p240_p8  ;;  %s477_s29 = scalar_lea.vmem [#allocation13], %s2790_s20 }
  0x5a   : > { %s485_s18 = sshll.u32 %s477_s29, 4  ;;  %494 = sbr.rel (%p2837_p13) target bundleno = 764 (0x2fc), region = 64  ;;  %s486_s18 = int_to_ptr.vmem [resolvable:$true] %s485_s18 }
  0x5b   : > { %2065 = dma.hbm_to_vmem [thread:$0]  (!%p2801_p3), %s484_s3, 128, %s486_s18, %s2812_s9  }
  0x5c   : > { %s443_s8 = scalar_lea.hbm %s3787_s6, %s1997_s0 }
  0x5d   : > { %s445_s24 = sshll.u32 %s443_s8, 4  ;;  %s446_s24 = int_to_ptr.hbm [resolvable:$true] %s445_s24 }
  0x5e   : > { %2059 = dma.hbm_to_vmem [thread:$0]  (!%p2057_p0), %s446_s24, 128, %s448_s27, %s2730_s13  }
  0x5f   : > { %2481 = dma.done.wait (%p219_p6), [#allocation6], 16  }
  0x60   : > { %2483 = vsyncadd (%p219_p6), [#allocation6], 4294967280 }
  0x61   : > { %2485 = dma.done.wait (%p219_p6), [#allocation4], 2048  }
  0x62   : > { %2487 = vsyncadd (%p219_p6), [#allocation4], 4294965248  ;;  %s506_s29 = sand.u32 1, %s2736_s2   ;;  %s508_s3 = sand.u32 1, %s2538_s28  }
  0x63   : > { %s2005_s9 = sshll.u32 %s508_s3, 7  ;;  %s507_s13 = scalar_lea.sflag [#allocation9], %s506_s29 }
  0x64   : > { %s2896_s20 = scalar_lea.vmem [#allocation8], %s2005_s9 }
  0x65   : > { %2489 = dma.done.wait (%p2824_p10), %s507_s13, 2048  }
  0x66   : > { %2491 = vsyncadd (%p2824_p10), %s507_s13, 4294965248  ;;  %s518_s5 = sand.u32 1, %s2526_s25  }
  0x67   : > { %s2903_s30 = sshll.u32 %s518_s5, 3 }
  0x68   : > { %s520_s7 = scalar_lea.vmem [#allocation10], %s2903_s30 }
  0x69   : > { %2493 = dma.done.wait (%p2867_p4), %s507_s13, 128  }
  0x6a   : > { %2495 = vsyncadd (%p2867_p4), %s507_s13, 4294967168  ;;  %s2911_s2 = sand.u32 1, %s2514_s22   ;;  %s527_s1 = scalar_lea.sflag [#allocation12], %s506_s29 }
  0x6b   : > { %s2914_s18 = sshll.u32 %s2911_s2, 3 }
  0x6c   : > { %s530_s12 = scalar_lea.vmem [#allocation11], %s2914_s18 }
  0x6d   : > { %2497 = dma.done.wait (%p2833_p12), %s527_s1, 256  }
  0x6e   : > { %2499 = vsyncadd (%p2833_p12), %s527_s1, 4294967040  ;;  %s540_s0 = scalar_lea.vmem [#allocation13], %s2914_s18 }
  0x6f   : > { %546 = sfence }
  0x70   : > { %s595_s11 = scalar_lea.vmem [#allocation14], %s2914_s18  ;;  %s602_s10 = scalar_lea.vmem [#allocation15], %s2914_s18 }
  0x71   : > { %s3789_s17 = sld [smem:[#allocation25_spill]] }
  0x77   : > { %p2011_p4 = scmp.ne.s32.totalorder %s3789_s17, 0 }
  0x79   : > { %607 = sbr.rel (%p2011_p4) target bundleno = 128 (0x80), region = 92 }
  0x7e   : > { %v2569_v0 = vmov 0.0  }
  0x7f   : > { %608 = vst [vmem:[#allocation2] sm:$0xff] %v2569_v0 }
  0x80 PF: > { %v626_v1 = vld [vmem:[%s2896_s20 + $0x78] sm:$0xff]  ;;  %v625_v2 = vld [vmem:[%s2896_s20 + $0x70] sm:$0xff]  ;;  %v624_v3 = vld [vmem:[%s2896_s20 + $0x68] sm:$0xff]  ;;  %s3790_s15 = sld [smem:[#allocation25_spill]] }
  0x81   : > { %v2928_v4 = vand.u32 4294901760, %v626_v1  ;;  %v2930_v5 = vand.u32 4294901760, %v625_v2  ;;  %v2932_v6 = vand.u32 4294901760, %v624_v3  ;;  %v623_v7 = vld [vmem:[%s2896_s20 + $0x60] sm:$0xff]  ;;  %v622_v8 = vld [vmem:[%s2896_s20 + $0x58] sm:$0xff]  ;;  %v621_v9 = vld [vmem:[%s2896_s20 + $0x50] sm:$0xff] }
  0x82   : > { %v2937_v10 = vand.u32 4294901760, %v623_v7  ;;  %v2939_v11 = vand.u32 4294901760, %v622_v8  ;;  %v2941_v12 = vand.u32 4294901760, %v621_v9  ;;  %v620_v13 = vld [vmem:[%s2896_s20 + $0x48] sm:$0xff]  ;;  %v619_v14 = vld [vmem:[%s2896_s20 + $0x40] sm:$0xff]  ;;  %v618_v19 = vld [vmem:[%s2896_s20 + $0x38] sm:$0xff] }
  0x83   : > { %628 = vmatpush.msra.mxu0 %v2928_v4  ;;  %v2947_v15 = vsub.f32 %v626_v1, %v2928_v4  ;;  %v2950_v16 = vsub.f32 %v625_v2, %v2930_v5  ;;  %v2953_v17 = vsub.f32 %v624_v3, %v2932_v6  ;;  %v2955_v18 = vand.u32 4294901760, %v620_v13  ;;  %824 = vmatpush.msra.mxu3 %v2928_v4  ;;  %v617_v27 = vld [vmem:[%s2896_s20 + $0x30] sm:$0xff]  ;;  %v616_v37 = vld [vmem:[%s2896_s20 + $0x28] sm:$0xff]  ;;  %v615_v43 = vld [vmem:[%s2896_s20 + $0x20] sm:$0xff] }
  0x84   : > { %v2960_v20 = vsub.f32 %v623_v7, %v2937_v10  ;;  %v2963_v21 = vsub.f32 %v622_v8, %v2939_v11  ;;  %v2966_v22 = vsub.f32 %v621_v9, %v2941_v12  ;;  %v2972_v26 = vand.u32 4294901760, %v619_v14  ;;  %v614_v48 = vld [vmem:[%s2896_s20 + $0x18] sm:$0xff]  ;;  %v613_v56 = vld [vmem:[%s2896_s20 + $0x10] sm:$0xff]  ;;  %v612_v61 = vld [vmem:[%s2896_s20 + $0x8] sm:$0xff] }
  0x85   : > { %630 = vmatpush.msra.mxu0 %v2930_v5  ;;  %v670_v23 = vand.u32 4294901760, %v2947_v15  ;;  %v676_v24 = vand.u32 4294901760, %v2950_v16  ;;  %v682_v25 = vand.u32 4294901760, %v2953_v17  ;;  %771 = vmatpush.msra.mxu2 %v2947_v15  ;;  %v2977_v29 = vand.u32 4294901760, %v618_v19  ;;  %v611_v2 = vld [vmem:[%s2896_s20] sm:$0xff] }
  0x86   : > { %v688_v28 = vand.u32 4294901760, %v2960_v20  ;;  %v2980_v30 = vsub.f32 %v620_v13, %v2955_v18  ;;  %826 = vmatpush.msra.mxu3 %v2930_v5  ;;  %v694_v34 = vand.u32 4294901760, %v2963_v21  ;;  %v700_v35 = vand.u32 4294901760, %v2966_v22  ;;  %v610_v8 = vld [vmem:[%s520_s7] sm:$0xff]  ;;  %p2012_p3 = scmp.ne.s32.totalorder %s3790_s15, 1 }
  0x87   : > { %632 = vmatpush.msra.mxu0 %v2932_v6  ;;  %v671_v31 = vsub.f32 %v2947_v15, %v670_v23  ;;  %v677_v32 = vsub.f32 %v2950_v16, %v676_v24  ;;  %v683_v33 = vsub.f32 %v2953_v17, %v682_v25  ;;  %774 = vmatpush.msra.mxu2 %v2950_v16  ;;  %v2996_v36 = vand.u32 4294901760, %v617_v27 }
  0x88   : > { %828 = vmatpush.msra.mxu3 %v2932_v6  ;;  %v689_v40 = vsub.f32 %v2960_v20, %v688_v28  ;;  %v3005_v41 = vsub.f32 %v619_v14, %v2972_v26  ;;  %v706_v42 = vand.u32 4294901760, %v2980_v30  ;;  %v695_v45 = vsub.f32 %v2963_v21, %v694_v34 }
  0x89   : > { %v672_v38 = vand.u32 4294901760, %v671_v31  ;;  %634 = vmatpush.msra.mxu0 %v2937_v10  ;;  %v678_v39 = vand.u32 4294901760, %v677_v32  ;;  %777 = vmatpush.msra.mxu2 %v2953_v17  ;;  %v684_v44 = vand.u32 4294901760, %v683_v33  ;;  %v3015_v46 = vand.u32 4294901760, %v616_v37 }
  0x8a   : > { %830 = vmatpush.msra.mxu3 %v2937_v10  ;;  %v3018_v47 = vsub.f32 %v618_v19, %v2977_v29  ;;  %v701_v49 = vsub.f32 %v2966_v22, %v700_v35  ;;  %v690_v50 = vand.u32 4294901760, %v689_v40  ;;  %v712_v51 = vand.u32 4294901760, %v3005_v41 }
  0x8b   : > { %673 = vmatpush.msra.mxu1 %v672_v38  ;;  %636 = vmatpush.msra.mxu0 %v2939_v11  ;;  %v3028_v52 = vand.u32 4294901760, %v615_v43  ;;  %v3031_v53 = vsub.f32 %v617_v27, %v2996_v36  ;;  %v707_v54 = vsub.f32 %v2980_v30, %v706_v42  ;;  %v3036_v55 = vand.u32 4294901760, %v614_v48 }
  0x8c   : > { %780 = vmatpush.msra.mxu2 %v2960_v20  ;;  %832 = vmatpush.msra.mxu3 %v2939_v11  ;;  %v696_v57 = vand.u32 4294901760, %v695_v45  ;;  %v718_v58 = vand.u32 4294901760, %v3018_v47  ;;  %v3044_v59 = vsub.f32 %v616_v37, %v3015_v46  ;;  %v702_v60 = vand.u32 4294901760, %v701_v49 }
  0x8d   : > { %679 = vmatpush.msra.mxu1 %v678_v39  ;;  %638 = vmatpush.msra.mxu0 %v2941_v12  ;;  %v713_v62 = vsub.f32 %v3005_v41, %v712_v51  ;;  %v724_v63 = vand.u32 4294901760, %v3031_v53  ;;  %v3054_v0 = vand.u32 4294901760, %v613_v56  ;;  %v3057_v1 = vsub.f32 %v615_v43, %v3028_v52 }
  0x8e   : > { %783 = vmatpush.msra.mxu2 %v2963_v21  ;;  %834 = vmatpush.msra.mxu3 %v2941_v12  ;;  %v708_v3 = vand.u32 4294901760, %v707_v54  ;;  %v3061_v7 = vsub.f32 %v614_v48, %v3036_v55  ;;  %v719_v9 = vsub.f32 %v3018_v47, %v718_v58  ;;  %v730_v13 = vand.u32 4294901760, %v3044_v59 }
  0x8f   : > { %685 = vmatpush.msra.mxu1 %v684_v44  ;;  %640 = vmatpush.msra.mxu0 %v2955_v18  ;;  %v3072_v14 = vand.u32 4294901760, %v612_v61  ;;  %v3074_v19 = vand.u32 4294901760, %v610_v8  ;;  %v3076_v27 = vand.u32 4294901760, %v611_v2  ;;  %v714_v31 = vand.u32 4294901760, %v713_v62 }
  0x90   : > { %786 = vmatpush.msra.mxu2 %v2966_v22  ;;  %836 = vmatpush.msra.mxu3 %v2955_v18  ;;  %v725_v32 = vsub.f32 %v3031_v53, %v724_v63  ;;  %v736_v33 = vand.u32 4294901760, %v3057_v1  ;;  %v3086_v37 = vsub.f32 %v613_v56, %v3054_v0  ;;  %v742_v38 = vand.u32 4294901760, %v3061_v7 }
  0x91   : > { %691 = vmatpush.msra.mxu1 %v690_v50  ;;  %642 = vmatpush.msra.mxu0 %v2972_v26  ;;  %v720_v39 = vand.u32 4294901760, %v719_v9  ;;  %v731_v40 = vsub.f32 %v3044_v59, %v730_v13  ;;  %v3096_v43 = vsub.f32 %v612_v61, %v3072_v14  ;;  %v660_v44 = vsub.f32 %v610_v8, %v3074_v19 }
  0x92   : > { %789 = vmatpush.msra.mxu2 %v2980_v30  ;;  %838 = vmatpush.msra.mxu3 %v2972_v26  ;;  %v726_v45 = vand.u32 4294901760, %v725_v32  ;;  %v737_v48 = vsub.f32 %v3057_v1, %v736_v33  ;;  %v748_v49 = vand.u32 4294901760, %v3086_v37  ;;  %v3107_v50 = vsub.f32 %v611_v2, %v3076_v27 }
  0x93   : > { %697 = vmatpush.msra.mxu1 %v696_v57  ;;  %644 = vmatpush.msra.mxu0 %v2977_v29  ;;  %v732_v54 = vand.u32 4294901760, %v731_v40  ;;  %v743_v56 = vsub.f32 %v3061_v7, %v742_v38  ;;  %v754_v57 = vand.u32 4294901760, %v3096_v43 }
  0x94   : > { %792 = vmatpush.msra.mxu2 %v3005_v41  ;;  %840 = vmatpush.msra.mxu3 %v2977_v29  ;;  %v738_v61 = vand.u32 4294901760, %v737_v48  ;;  %v749_v62 = vsub.f32 %v3086_v37, %v748_v49  ;;  %v760_v2 = vand.u32 4294901760, %v3107_v50 }
  0x95   : > { %703 = vmatpush.msra.mxu1 %v702_v60  ;;  %646 = vmatpush.msra.mxu0 %v2996_v36  ;;  %v661_v60 = vand.u32 4294901760, %v660_v44  ;;  %v755_v8 = vsub.f32 %v3096_v43, %v754_v57 }
  0x96   : > { %795 = vmatpush.msra.mxu2 %v3018_v47  ;;  %842 = vmatpush.msra.mxu3 %v2996_v36  ;;  %v761_v32 = vsub.f32 %v3107_v50, %v760_v2 }
  0x97   : > { %709 = vmatpush.msra.mxu1 %v708_v3  ;;  %648 = vmatpush.msra.mxu0 %v3015_v46  ;;  %v744_v3 = vand.u32 4294901760, %v743_v56  ;;  %v662_v9 = vsub.f32 %v660_v44, %v661_v60 }
  0x98   : > { %798 = vmatpush.msra.mxu2 %v3031_v53  ;;  %844 = vmatpush.msra.mxu3 %v3015_v46 }
  0x99   : > { %715 = vmatpush.msra.mxu1 %v714_v31  ;;  %650 = vmatpush.msra.mxu0 %v3028_v52  ;;  %v750_v31 = vand.u32 4294901760, %v749_v62  ;;  %v663_v40 = vand.u32 4294901760, %v662_v9 }
  0x9a   : > { %801 = vmatpush.msra.mxu2 %v3044_v59  ;;  %846 = vmatpush.msra.mxu3 %v3028_v52 }
  0x9b   : > { %721 = vmatpush.msra.mxu1 %v720_v39  ;;  %652 = vmatpush.msra.mxu0 %v3036_v55  ;;  %v756_v39 = vand.u32 4294901760, %v755_v8 }
  0x9c   : > { %804 = vmatpush.msra.mxu2 %v3057_v1  ;;  %848 = vmatpush.msra.mxu3 %v3036_v55 }
  0x9d   : > { %727 = vmatpush.msra.mxu1 %v726_v45  ;;  %654 = vmatpush.msra.mxu0 %v3054_v0  ;;  %v762_v45 = vand.u32 4294901760, %v761_v32 }
  0x9e   : > { %807 = vmatpush.msra.mxu2 %v3061_v7  ;;  %850 = vmatpush.msra.mxu3 %v3054_v0 }
  0x9f   : > { %733 = vmatpush.msra.mxu1 %v732_v54  ;;  %656 = vmatpush.msra.mxu0 %v3072_v14 }
  0xa0   : > { %810 = vmatpush.msra.mxu2 %v3086_v37  ;;  %852 = vmatpush.msra.mxu3 %v3072_v14 }
  0xa1   : > { %739 = vmatpush.msra.mxu1 %v738_v61  ;;  %658 = vmatpush.msra.mxu0 %v3076_v27 }
  0xa2   : > { %813 = vmatpush.msra.mxu2 %v3096_v43  ;;  %854 = vmatpush.msra.mxu3 %v3076_v27 }
  0xa3   : > { %865 = vmatpush.msrb.mxu0 %v670_v23  ;;  %745 = vmatpush.msra.mxu1 %v744_v3 }
  0xa4   : > { %816 = vmatpush.msra.mxu2 %v3107_v50  ;;  %858 = vmatmul.f32.vlgmr.msra.gmra.mxu3 %v661_v60 }
  0xa5   : > { %869 = vmatpush.msrb.mxu0 %v676_v24  ;;  %751 = vmatpush.msra.mxu1 %v750_v31 }
  0xa6   : > { %819 = vmatmul.f32.vlgmr.msra.gmra.mxu2 %v660_v44  ;;  %664 = vmatmul.f32.vlgmr.msra.gmra.mxu0 %v663_v40 }
  0xa7   : > { %873 = vmatpush.msrb.mxu0 %v682_v25  ;;  %757 = vmatpush.msra.mxu1 %v756_v39 }
  0xa9   : > { %877 = vmatpush.msrb.mxu0 %v688_v28  ;;  %763 = vmatpush.msra.mxu1 %v762_v45 }
  0xaa   : > { %765 = vmatmul.f32.vlgmr.msra.gmra.mxu1 %v3074_v19 }
  0xab   : > { %932 = vmatpush.msrb.mxu1 %v2928_v4  ;;  %881 = vmatpush.msrb.mxu0 %v694_v34 }
  0xad   : > { %934 = vmatpush.msrb.mxu1 %v2930_v5  ;;  %885 = vmatpush.msrb.mxu0 %v700_v35 }
  0xaf   : > { %936 = vmatpush.msrb.mxu1 %v2932_v6  ;;  %889 = vmatpush.msrb.mxu0 %v706_v42 }
  0xb1   : > { %938 = vmatpush.msrb.mxu1 %v2937_v10  ;;  %893 = vmatpush.msrb.mxu0 %v712_v51 }
  0xb3   : > { %940 = vmatpush.msrb.mxu1 %v2939_v11  ;;  %897 = vmatpush.msrb.mxu0 %v718_v58 }
  0xb5   : > { %942 = vmatpush.msrb.mxu1 %v2941_v12  ;;  %901 = vmatpush.msrb.mxu0 %v724_v63 }
  0xb7   : > { %944 = vmatpush.msrb.mxu1 %v2955_v18  ;;  %905 = vmatpush.msrb.mxu0 %v730_v13  ;;  %v609_v18 = vld [vmem:[#allocation2] sm:$0xff] }
  0xb9   : > { %946 = vmatpush.msrb.mxu1 %v2972_v26  ;;  %909 = vmatpush.msrb.mxu0 %v736_v33 }
  0xbb   : > { %948 = vmatpush.msrb.mxu1 %v2977_v29  ;;  %913 = vmatpush.msrb.mxu0 %v742_v38 }
  0xbd   : > { %950 = vmatpush.msrb.mxu1 %v2996_v36  ;;  %917 = vmatpush.msrb.mxu0 %v748_v49 }
  0xbf   : > { %952 = vmatpush.msrb.mxu1 %v3015_v46  ;;  %921 = vmatpush.msrb.mxu0 %v754_v57 }
  0xc1   : > { %954 = vmatpush.msrb.mxu1 %v3028_v52  ;;  %925 = vmatpush.msrb.mxu0 %v760_v2 }
  0xc2   : > { %927 = vmatmul.f32.vlgmr.msrb.gmra.mxu0 %v3074_v19 }
  0xc3   : > { %956 = vmatpush.msrb.mxu1 %v3036_v55 }
  0xc5   : > { %958 = vmatpush.msrb.mxu1 %v3054_v0 }
  0xc7   : > { %960 = vmatpush.msrb.mxu1 %v3072_v14 }
  0xc9   : > { %962 = vmatpush.msrb.mxu1 %v3076_v27 }
  0xca   : > { %964 = vmatmul.f32.vlgmr.msrb.gmra.mxu1 %v3074_v19 }
 0x123   : > { %v665_v5 = vpop.f32.mrf.mxu0 }
 0x127   : > { %v766_v4 = vpop.f32.mrf.mxu1  ;;  %v859_v12 = vpop.f32.mrf.mxu3 }
 0x128   : > { %v767_v6 = vadd.f32 %v766_v4, %v665_v5 }
 0x129   : > { %v820_v10 = vpop.f32.mrf.mxu2 }
 0x12a   : > { %v821_v11 = vadd.f32 %v820_v10, %v767_v6 }
 0x12c   : > { %v860_v15 = vadd.f32 %v859_v12, %v821_v11 }
 0x13f   : > { %v928_v16 = vpop.f32.mrf.mxu0 }
 0x140   : > { %v929_v17 = vadd.f32 %v928_v16, %v860_v15 }
 0x147   : > { %v965_v20 = vpop.f32.mrf.mxu1 }
 0x148   : > { %v966_v21 = vadd.f32 %v965_v20, %v929_v17  ;;  %973 = sbr.rel (%p2012_p3) target bundleno = 723 (0x2d3), region = 96 }
 0x14a   : > { %v968_v22 = vadd.f32 %v966_v21, %v609_v18 }
 0x14c   : > { %969 = vst [vmem:[#allocation2] sm:$0xff] %v968_v22 }
 0x14d   : > { %v1003_v23 = vld [vmem:[#allocation7 + $0x78] sm:$0xff]  ;;  %v1002_v24 = vld [vmem:[#allocation7 + $0x70] sm:$0xff]  ;;  %v1001_v25 = vld [vmem:[#allocation7 + $0x68] sm:$0xff]  ;;  %s3270_s4 = sld [smem:[#allocation3]]  ;;  %vm1697_vm6 = vcmask 1040384  }
 0x14e   : > { %v3182_v26 = vand.u32 4294901760, %v1003_v23  ;;  %v3184_v28 = vand.u32 4294901760, %v1002_v24  ;;  %v3186_v29 = vand.u32 4294901760, %v1001_v25  ;;  %v1000_v30 = vld [vmem:[#allocation7 + $0x60] sm:$0xff]  ;;  %v999_v34 = vld [vmem:[#allocation7 + $0x58] sm:$0xff]  ;;  %v998_v35 = vld [vmem:[#allocation7 + $0x50] sm:$0xff] }
 0x14f   : > { %v3188_v36 = vand.u32 4294901760, %v1000_v30  ;;  %v3190_v41 = vand.u32 4294901760, %v999_v34  ;;  %v3192_v42 = vand.u32 4294901760, %v998_v35  ;;  %v997_v46 = vld [vmem:[#allocation7 + $0x48] sm:$0xff]  ;;  %v996_v47 = vld [vmem:[#allocation7 + $0x40] sm:$0xff]  ;;  %v995_v14 = vld [vmem:[#allocation7 + $0x38] sm:$0xff] }
 0x150   : > { %v3195_v51 = vsub.f32 %v1003_v23, %v3182_v26  ;;  %1006 = vmatpush.msra.mxu0 %v3182_v26  ;;  %v3199_v52 = vsub.f32 %v1002_v24, %v3184_v28  ;;  %1202 = vmatpush.msra.mxu3 %v3182_v26  ;;  %v3203_v53 = vsub.f32 %v1001_v25, %v3186_v29  ;;  %v3205_v55 = vand.u32 4294901760, %v997_v46  ;;  %v994_v49 = vld [vmem:[#allocation7 + $0x30] sm:$0xff]  ;;  %v993_v50 = vld [vmem:[#allocation7 + $0x28] sm:$0xff]  ;;  %v992_v2 = vld [vmem:[#allocation7 + $0x20] sm:$0xff]  ;;  %s3794_s24 = sld [smem:[#allocation42_spill]] }
 0x151   : > { %v3208_v58 = vsub.f32 %v1000_v30, %v3188_v36  ;;  %v3211_v59 = vsub.f32 %v999_v34, %v3190_v41  ;;  %v3214_v63 = vsub.f32 %v998_v35, %v3192_v42  ;;  %v3227_v13 = vand.u32 4294901760, %v996_v47  ;;  %v991_v39 = vld [vmem:[#allocation7 + $0x18] sm:$0xff]  ;;  %v990_v10 = vld [vmem:[#allocation7 + $0x10] sm:$0xff]  ;;  %v989_v18 = vld [vmem:[#allocation7 + $0x8] sm:$0xff]  ;;  %s3797_s29 = sld [smem:[#allocation43_spill]] }
 0x152   : > { %1149 = vmatpush.msra.mxu2 %v3195_v51  ;;  %1008 = vmatpush.msra.mxu0 %v3184_v28  ;;  %v3219_v0 = vand.u32 4294901760, %v3195_v51  ;;  %v3222_v1 = vand.u32 4294901760, %v3199_v52  ;;  %v3225_v7 = vand.u32 4294901760, %v3203_v53  ;;  %v3237_v33 = vsub.f32 %v997_v46, %v3205_v55  ;;  %v988_v24 = vld [vmem:[#allocation7] sm:$0xff]  ;;  %s3805_s13 = sld [smem:[#allocation45_spill]] }
 0x153   : > { %1204 = vmatpush.msra.mxu3 %v3184_v28  ;;  %v3231_v19 = vand.u32 4294901760, %v3208_v58  ;;  %v3234_v27 = vand.u32 4294901760, %v3211_v59  ;;  %v3249_v44 = vand.u32 4294901760, %v3214_v63  ;;  %v3251_v48 = vand.u32 4294901760, %v995_v14  ;;  %s3806_s30 = sld [smem:[#allocation46_spill]] }
 0x154   : > { %1152 = vmatpush.msra.mxu2 %v3199_v52  ;;  %v1049_v37 = vsub.f32 %v3195_v51, %v3219_v0  ;;  %1010 = vmatpush.msra.mxu0 %v3186_v29  ;;  %v1055_v38 = vsub.f32 %v3199_v52, %v3222_v1  ;;  %v1061_v43 = vsub.f32 %v3203_v53, %v3225_v7  ;;  %v3268_v62 = vand.u32 4294901760, %v3237_v33  ;;  %s3807_s17 = sld [smem:[#allocation47_spill]] }
 0x155   : > { %1206 = vmatpush.msra.mxu3 %v3186_v29  ;;  %v1067_v57 = vsub.f32 %v3208_v58, %v3231_v19  ;;  %v3262_v60 = vsub.f32 %v996_v47, %v3227_v13  ;;  %v1073_v61 = vsub.f32 %v3211_v59, %v3234_v27  ;;  %v3277_v8 = vsub.f32 %v995_v14, %v3251_v48  ;;  %s2013_s15 = sld [smem:[#allocation3 + $0x1]] }
 0x156   : > { %v3253_v54 = vand.u32 4294901760, %v1049_v37  ;;  %1155 = vmatpush.msra.mxu2 %v3203_v53  ;;  %v3256_v56 = vand.u32 4294901760, %v1055_v38  ;;  %1012 = vmatpush.msra.mxu0 %v3188_v36  ;;  %v3274_v3 = vand.u32 4294901760, %v1061_v43  ;;  %v3279_v9 = vand.u32 4294901760, %v994_v49  ;;  %v3334_v25 = vld [vmem:[%s3794_s24] sm:$0x1] }
 0x157   : > { %1208 = vmatpush.msra.mxu3 %v3188_v36  ;;  %v3281_v31 = vand.u32 4294901760, %v993_v50  ;;  %v1079_v32 = vsub.f32 %v3214_v63, %v3249_v44  ;;  %v3289_v40 = vand.u32 4294901760, %v1067_v57  ;;  %v3292_v45 = vand.u32 4294901760, %v3262_v60  ;;  %v980_v37 = vld [vmem:[%s3797_s29] sm:$0x1] }
 0x158   : > { %1051 = vmatpush.msra.mxu1 %v3253_v54  ;;  %1158 = vmatpush.msra.mxu2 %v3208_v58  ;;  %v3295_v4 = vsub.f32 %v994_v49, %v3279_v9  ;;  %v3297_v5 = vand.u32 4294901760, %v992_v2  ;;  %v1085_v6 = vsub.f32 %v3237_v33, %v3268_v62  ;;  %v3305_v11 = vand.u32 4294901760, %v1073_v61 }
 0x159   : > { %1014 = vmatpush.msra.mxu0 %v3190_v41  ;;  %1210 = vmatpush.msra.mxu3 %v3190_v41  ;;  %v3308_v12 = vand.u32 4294901760, %v3277_v8  ;;  %v3311_v15 = vsub.f32 %v993_v50, %v3281_v31  ;;  %v3313_v16 = vand.u32 4294901760, %v991_v39  ;;  %v3316_v17 = vand.u32 4294901760, %v1079_v32 }
 0x15a   : > { %1057 = vmatpush.msra.mxu1 %v3256_v56  ;;  %1161 = vmatpush.msra.mxu2 %v3211_v59  ;;  %3791 = vst [vmem:[#allocation35_spill] sm:$0xff] %v3295_v4  ;;  %v1091_v20 = vsub.f32 %v3262_v60, %v3292_v45  ;;  %v3324_v21 = vand.u32 4294901760, %v3295_v4  ;;  %v3327_v22 = vsub.f32 %v992_v2, %v3297_v5  ;;  %v3329_v23 = vand.u32 4294901760, %v990_v10 }
 0x15b   : > { %1016 = vmatpush.msra.mxu0 %v3192_v42  ;;  %1212 = vmatpush.msra.mxu3 %v3192_v42  ;;  %3792 = vst [vmem:[#allocation36_spill] sm:$0xff] %v3311_v15  ;;  %v3337_v30 = vand.u32 4294901760, %v1085_v6  ;;  %v3341_v34 = vstv %s3270_s4  ;;  %v1097_v35 = vsub.f32 %v3277_v8, %v3308_v12  ;;  %v3348_v46 = vand.u32 4294901760, %v3311_v15  ;;  %s2014_s4 = sld [smem:[#allocation3 + $0x2]] }
 0x15c   : > { %1063 = vmatpush.msra.mxu1 %v3274_v3  ;;  %1164 = vmatpush.msra.mxu2 %v3214_v63  ;;  %3793 = vst [vmem:[#allocation37_spill] sm:$0xff] %v3327_v22  ;;  %v3351_v47 = vsub.f32 %v991_v39, %v3313_v16  ;;  %v3353_v14 = vand.u32 4294901760, %v989_v18  ;;  %v3360_v38 = vand.u32 4294901760, %v988_v24  ;;  %v979_v43 = vmul.f32 %v3341_v34, %v3334_v25 }
 0x15d   : > { %1018 = vmatpush.msra.mxu0 %v3205_v55  ;;  %1214 = vmatpush.msra.mxu3 %v3205_v55  ;;  %3795 = vst [vmem:[#allocation38_spill] sm:$0xff] %v3341_v34  ;;  %v3366_v49 = vand.u32 4294901760, %v1091_v20  ;;  %v1103_v50 = vsub.f32 %v3295_v4, %v3324_v21  ;;  %v3371_v57 = vand.u32 4294901760, %v3327_v22  ;;  %v3374_v61 = vsub.f32 %v990_v10, %v3329_v23 }
 0x15e   : > { %1069 = vmatpush.msra.mxu1 %v3289_v40  ;;  %1167 = vmatpush.msra.mxu2 %v3237_v33  ;;  %3796 = vst [vmem:[#allocation39_spill] sm:$0xff] %v3351_v47  ;;  %v3378_v2 = vadd.f32 %v980_v37, %v979_v43  ;;  %v3382_v32 = vand.u32 4294901760, %v1097_v35  ;;  %v1109_v39 = vsub.f32 %v3311_v15, %v3348_v46  ;;  %v3387_v6 = vand.u32 4294901760, %v3351_v47 }
 0x15f   : > { %1020 = vmatpush.msra.mxu0 %v3227_v13  ;;  %1216 = vmatpush.msra.mxu3 %v3227_v13  ;;  %3798 = vst [vmem:[#allocation40_spill] sm:$0xff] %v3374_v61  ;;  %v3390_v10 = vsub.f32 %v989_v18, %v3353_v14  ;;  %v3396_v20 = vand.u32 4294901760, %v1103_v50  ;;  %v1115_v35 = vsub.f32 %v3327_v22, %v3371_v57  ;;  %v3401_v37 = vand.u32 4294901760, %v3374_v61 }
 0x160   : > { %1075 = vmatpush.msra.mxu1 %v3305_v11  ;;  %1170 = vmatpush.msra.mxu2 %v3262_v60  ;;  %v3404_v43 = vsub.f32 %v988_v24, %v3360_v38  ;;  %v982_v18 = vmul.f32 1.442695, %v3378_v2  ;;  %v3411_v50 = vand.u32 4294901760, %v1109_v39  ;;  %v1121_v34 = vsub.f32 %v3351_v47, %v3387_v6 }
 0x161   : > { %1022 = vmatpush.msra.mxu0 %v3251_v48  ;;  %1218 = vmatpush.msra.mxu3 %v3251_v48  ;;  %v3422_v24 = vand.u32 4294901760, %v1115_v35  ;;  %v1127_v39 = vsub.f32 %v3374_v61, %v3401_v37  ;;  %vm984_vm0 = vcmp.gt.f32.partialorder %v3378_v2, 0.0 }
 0x162   : > { %1081 = vmatpush.msra.mxu1 %v3316_v17  ;;  %1173 = vmatpush.msra.mxu2 %v3277_v8  ;;  %2197 = vpow2.f32 %v982_v18 }
 0x163   : > { %1024 = vmatpush.msra.mxu0 %v3279_v9  ;;  %1220 = vmatpush.msra.mxu3 %v3279_v9 }
 0x164   : > { %1087 = vmatpush.msra.mxu1 %v3337_v30  ;;  %1176 = vmatpush.msra.mxu2 %v3295_v4  ;;  %v3433_v4 = vand.u32 4294901760, %v1121_v34 }
 0x165   : > { %1026 = vmatpush.msra.mxu0 %v3281_v31  ;;  %1222 = vmatpush.msra.mxu3 %v3281_v31 }
 0x166   : > { %1093 = vmatpush.msra.mxu1 %v3366_v49  ;;  %1179 = vmatpush.msra.mxu2 %v3311_v15  ;;  %v3416_v15 = vand.u32 4294901760, %v3390_v10 }
 0x167   : > { %1028 = vmatpush.msra.mxu0 %v3297_v5  ;;  %1224 = vmatpush.msra.mxu3 %v3297_v5 }
 0x168   : > { %1099 = vmatpush.msra.mxu1 %v3382_v32  ;;  %1182 = vmatpush.msra.mxu2 %v3327_v22  ;;  %v3427_v22 = vand.u32 4294901760, %v3404_v43  ;;  %v1133_v35 = vsub.f32 %v3390_v10, %v3416_v15 }
 0x169   : > { %1030 = vmatpush.msra.mxu0 %v3313_v16  ;;  %1226 = vmatpush.msra.mxu3 %v3313_v16 }
 0x16a   : > { %1105 = vmatpush.msra.mxu1 %v3396_v20  ;;  %1185 = vmatpush.msra.mxu2 %v3351_v47  ;;  %v3441_v47 = vand.u32 4294901760, %v1127_v39  ;;  %v1139_v18 = vsub.f32 %v3404_v43, %v3427_v22  ;;  %v3449_v34 = vand.u32 4294901760, %v1133_v35 }
 0x16b   : > { %1032 = vmatpush.msra.mxu0 %v3329_v23  ;;  %1228 = vmatpush.msra.mxu3 %v3329_v23 }
 0x16c   : > { %1111 = vmatpush.msra.mxu1 %v3411_v50  ;;  %1188 = vmatpush.msra.mxu2 %v3374_v61  ;;  %v3451_v61 = vpop.eup %2197  ;;  %v3457_v39 = vand.u32 4294901760, %v1139_v18 }
 0x16d   : > { %1034 = vmatpush.msra.mxu0 %v3353_v14  ;;  %1230 = vmatpush.msra.mxu3 %v3353_v14  ;;  %v987_v35 = vmin.f32 %v3451_v61, 1.0 }
 0x16e   : > { %1117 = vmatpush.msra.mxu1 %v3422_v24  ;;  %1191 = vmatpush.msra.mxu2 %v3390_v10 }
 0x16f   : > { %1036 = vmatpush.msra.mxu0 %v3360_v38  ;;  %1232 = vmatpush.msra.mxu3 %v3360_v38 }
 0x170   : > { %1123 = vmatpush.msra.mxu1 %v3433_v4  ;;  %1194 = vmatpush.msra.mxu2 %v3404_v43 }
 0x171   : > { %1243 = vmatpush.msrb.mxu0 %v3219_v0  ;;  %1393 = vmatpush.msrb.mxu3 %v3253_v54  ;;  %v1004_v54 = vmul.f32 %v987_v35, %v3334_v25 }
 0x172   : > { %1348 = vmatpush.msrb.mxu2 %v3182_v26  ;;  %1129 = vmatpush.msra.mxu1 %v3441_v47 }
 0x173   : > { %1247 = vmatpush.msrb.mxu0 %v3222_v1  ;;  %1399 = vmatpush.msrb.mxu3 %v3256_v56  ;;  %v3481_v56 = vand.u32 4294901760, %v1004_v54 }
 0x174   : > { %1350 = vmatpush.msrb.mxu2 %v3184_v28  ;;  %1135 = vmatpush.msra.mxu1 %v3449_v34 }
 0x175   : > { %1251 = vmatpush.msrb.mxu0 %v3225_v7  ;;  %1405 = vmatpush.msrb.mxu3 %v3274_v3  ;;  %v1038_v3 = vsub.f32 %v1004_v54, %v3481_v56  ;;  %v1695_v54 = vld [vmem:[%s3807_s17] sm:$0x1] }
 0x176   : > { %1352 = vmatpush.msrb.mxu2 %v3186_v29  ;;  %1141 = vmatpush.msra.mxu1 %v3457_v39 }
 0x177   : > { %1255 = vmatpush.msrb.mxu0 %v3231_v19  ;;  %1411 = vmatpush.msrb.mxu3 %v3289_v40  ;;  %v1039_v40 = vand.u32 4294901760, %v1038_v3 }
 0x178   : > { %1310 = vmatpush.msrb.mxu1 %v3182_v26  ;;  %1354 = vmatpush.msrb.mxu2 %v3188_v36 }
 0x179   : > { %1259 = vmatpush.msrb.mxu0 %v3234_v27  ;;  %1417 = vmatpush.msrb.mxu3 %v3305_v11  ;;  %v1040_v11 = vsub.f32 %v1038_v3, %v1039_v40 }
 0x17a   : > { %1312 = vmatpush.msrb.mxu1 %v3184_v28  ;;  %1356 = vmatpush.msrb.mxu2 %v3190_v41 }
 0x17b   : > { %1263 = vmatpush.msrb.mxu0 %v3249_v44  ;;  %1423 = vmatpush.msrb.mxu3 %v3316_v17  ;;  %v1041_v17 = vand.u32 4294901760, %v1040_v11  ;;  %v1701_v11 = vstv %s2013_s15 }
 0x17c   : > { %1314 = vmatpush.msrb.mxu1 %v3186_v29  ;;  %1358 = vmatpush.msrb.mxu2 %v3192_v42 }
 0x17d   : > { %1267 = vmatpush.msrb.mxu0 %v3268_v62  ;;  %1429 = vmatpush.msrb.mxu3 %v3337_v30 }
 0x17e   : > { %1316 = vmatpush.msrb.mxu1 %v3188_v36  ;;  %1360 = vmatpush.msrb.mxu2 %v3205_v55 }
 0x17f   : > { %1271 = vmatpush.msrb.mxu0 %v3292_v45  ;;  %1435 = vmatpush.msrb.mxu3 %v3366_v49 }
 0x180   : > { %1318 = vmatpush.msrb.mxu1 %v3190_v41  ;;  %1362 = vmatpush.msrb.mxu2 %v3227_v13 }
 0x181   : > { %1275 = vmatpush.msrb.mxu0 %v3308_v12  ;;  %1441 = vmatpush.msrb.mxu3 %v3382_v32 }
 0x182   : > { %1320 = vmatpush.msrb.mxu1 %v3192_v42  ;;  %1364 = vmatpush.msrb.mxu2 %v3251_v48 }
 0x183   : > { %1279 = vmatpush.msrb.mxu0 %v3324_v21  ;;  %1447 = vmatpush.msrb.mxu3 %v3396_v20 }
 0x184   : > { %1322 = vmatpush.msrb.mxu1 %v3205_v55  ;;  %1366 = vmatpush.msrb.mxu2 %v3279_v9 }
 0x185   : > { %1283 = vmatpush.msrb.mxu0 %v3348_v46  ;;  %1453 = vmatpush.msrb.mxu3 %v3411_v50 }
 0x186   : > { %1324 = vmatpush.msrb.mxu1 %v3227_v13  ;;  %1368 = vmatpush.msrb.mxu2 %v3281_v31 }
 0x187   : > { %1287 = vmatpush.msrb.mxu0 %v3371_v57  ;;  %1459 = vmatpush.msrb.mxu3 %v3422_v24 }
 0x188   : > { %1326 = vmatpush.msrb.mxu1 %v3251_v48  ;;  %1370 = vmatpush.msrb.mxu2 %v3297_v5 }
 0x189   : > { %1291 = vmatpush.msrb.mxu0 %v3387_v6  ;;  %1465 = vmatpush.msrb.mxu3 %v3433_v4  ;;  %v2015_v4 = vadd.f32 -1.0, %v3451_v61 }
 0x18a   : > { %1328 = vmatpush.msrb.mxu1 %v3279_v9  ;;  %1372 = vmatpush.msrb.mxu2 %v3313_v16 }
 0x18b   : > { %1295 = vmatpush.msrb.mxu0 %v3401_v37  ;;  %1471 = vmatpush.msrb.mxu3 %v3441_v47  ;;  %v986_v25 = vsel %vm984_vm0, %v3378_v2, %v2015_v4 }
 0x18c   : > { %1330 = vmatpush.msrb.mxu1 %v3281_v31  ;;  %1374 = vmatpush.msrb.mxu2 %v3329_v23 }
 0x18d   : > { %1197 = vmatmul.f32.vlgmr.msra.gmra.mxu2 %v1038_v3  ;;  %1299 = vmatpush.msrb.mxu0 %v3416_v15 }
 0x18e   : > { %1332 = vmatpush.msrb.mxu1 %v3297_v5  ;;  %1376 = vmatpush.msrb.mxu2 %v3353_v14 }
 0x18f   : > { %1477 = vmatpush.msrb.mxu3 %v3449_v34  ;;  %1042 = vmatmul.f32.vlgmr.msra.gmra.mxu0 %v1041_v17 }
 0x190   : > { %1334 = vmatpush.msrb.mxu1 %v3313_v16  ;;  %1378 = vmatpush.msrb.mxu2 %v3360_v38 }
 0x191   : > { %1236 = vmatmul.f32.vlgmr.msra.gmra.mxu3 %v1039_v40  ;;  %1303 = vmatpush.msrb.mxu0 %v3427_v22  ;;  %v1733_v40 = vld [vmem:[%s530_s12] sm:$0xff] }
 0x192   : > { %1336 = vmatpush.msrb.mxu1 %v3329_v23  ;;  %1585 = vmatpush.msra.mxu2 %v3219_v0  ;;  %v3538_v0 = vand.u32 4294901760, %v986_v25  ;;  %v1734_v17 = vsub.f32 0.0, %v1733_v40 }
 0x193   : > { %1483 = vmatpush.msrb.mxu3 %v3457_v39  ;;  %1143 = vmatmul.f32.vlgmr.msra.gmra.mxu1 %v3481_v56 }
 0x194   : > { %1338 = vmatpush.msrb.mxu1 %v3353_v14  ;;  %1491 = vmatpush.msra.mxu0 %v3195_v51  ;;  %v3801_v51 = vld [vmem:[#allocation37_spill] sm:$0xff] }
 0x195   : > { %1589 = vmatpush.msra.mxu2 %v3222_v1  ;;  %1652 = vmatpush.msra.mxu3 %v3182_v26  ;;  %v3804_v1 = vld [vmem:[#allocation38_spill] sm:$0xff] }
 0x196   : > { %1340 = vmatpush.msrb.mxu1 %v3360_v38  ;;  %1494 = vmatpush.msra.mxu0 %v3199_v52  ;;  %v3802_v52 = vld [vmem:[#allocation39_spill] sm:$0xff]  ;;  %2199 = vrcp.f32 %v3804_v1  ;;  %vm1721_vm1 = vweird.f32 %v3804_v1 }
 0x197   : > { %1593 = vmatpush.msra.mxu2 %v3225_v7  ;;  %1654 = vmatpush.msra.mxu3 %v3184_v28 }
 0x198   : > { %1544 = vmatpush.msra.mxu1 %v3182_v26  ;;  %1497 = vmatpush.msra.mxu0 %v3203_v53  ;;  %v1380_v26 = vsub.f32 %v986_v25, %v3538_v0  ;;  %v3803_v53 = vld [vmem:[#allocation40_spill] sm:$0xff]  ;;  %v1735_v25 = vld [vmem:[%s540_s0] sm:$0xff] }
 0x199   : > { %1597 = vmatpush.msra.mxu2 %v3231_v19  ;;  %1656 = vmatpush.msra.mxu3 %v3186_v29 }
 0x19a   : > { %1546 = vmatpush.msra.mxu1 %v3184_v28  ;;  %1305 = vmatmul.f32.vlgmr.msrb.gmra.mxu0 %v3481_v56  ;;  %v1381_v28 = vand.u32 4294901760, %v1380_v26 }
 0x19b   : > { %1500 = vmatpush.msra.mxu0 %v3208_v58  ;;  %1601 = vmatpush.msra.mxu2 %v3234_v27 }
 0x19c   : > { %1548 = vmatpush.msra.mxu1 %v3186_v29  ;;  %1658 = vmatpush.msra.mxu3 %v3188_v36  ;;  %v1382_v29 = vsub.f32 %v1380_v26, %v1381_v28 }
 0x19d   : > { %1342 = vmatmul.f32.vlgmr.msrb.gmra.mxu1 %v3481_v56  ;;  %1503 = vmatpush.msra.mxu0 %v3211_v59 }
 0x19e   : > { %1550 = vmatpush.msra.mxu1 %v3188_v36  ;;  %1605 = vmatpush.msra.mxu2 %v3249_v44  ;;  %v3799_v36 = vld [vmem:[#allocation35_spill] sm:$0xff]  ;;  %v2200_v44 = vpop.eup %2199 }
 0x19f   : > { %1660 = vmatpush.msra.mxu3 %v3190_v41  ;;  %1506 = vmatpush.msra.mxu0 %v3214_v63  ;;  %vm1722_vm2 = vweird.f32 %v2200_v44 }
 0x1a0   : > { %1552 = vmatpush.msra.mxu1 %v3190_v41  ;;  %1609 = vmatpush.msra.mxu2 %v3268_v62  ;;  %v1383_v41 = vand.u32 4294901760, %v1382_v29  ;;  %vm1723_vm3 = vmor %vm1721_vm1, %vm1722_vm2  ;;  %v1736_v29 = vadd.f32 %v1735_v25, %v1734_v17 }
 0x1a1   : > { %1662 = vmatpush.msra.mxu3 %v3192_v42  ;;  %1509 = vmatpush.msra.mxu0 %v3237_v33 }
 0x1a2   : > { %1554 = vmatpush.msra.mxu1 %v3192_v42  ;;  %1613 = vmatpush.msra.mxu2 %v3292_v45  ;;  %v3800_v42 = vld [vmem:[#allocation36_spill] sm:$0xff] }
 0x1a3   : > { %1664 = vmatpush.msra.mxu3 %v3205_v55  ;;  %1512 = vmatpush.msra.mxu0 %v3262_v60 }
 0x1a4   : > { %1556 = vmatpush.msra.mxu1 %v3205_v55  ;;  %1617 = vmatpush.msra.mxu2 %v3308_v12 }
 0x1a5   : > { %1666 = vmatpush.msra.mxu3 %v3227_v13  ;;  %1515 = vmatpush.msra.mxu0 %v3277_v8 }
 0x1a6   : > { %1558 = vmatpush.msra.mxu1 %v3227_v13  ;;  %1621 = vmatpush.msra.mxu2 %v3324_v21  ;;  %v1346_v13 = vld [vmem:[%s3805_s13] sm:$0x1] }
 0x1a7   : > { %1668 = vmatpush.msra.mxu3 %v3251_v48  ;;  %1518 = vmatpush.msra.mxu0 %v3799_v36 }
 0x1a8   : > { %1560 = vmatpush.msra.mxu1 %v3251_v48  ;;  %1625 = vmatpush.msra.mxu2 %v3348_v46 }
 0x1a9   : > { %1670 = vmatpush.msra.mxu3 %v3279_v9  ;;  %1521 = vmatpush.msra.mxu0 %v3800_v42 }
 0x1aa   : > { %1562 = vmatpush.msra.mxu1 %v3279_v9  ;;  %1629 = vmatpush.msra.mxu2 %v3371_v57  ;;  %v1717_v9 = vmul.f32 %v2200_v44, %v3804_v1 }
 0x1ab   : > { %1672 = vmatpush.msra.mxu3 %v3281_v31  ;;  %1384 = vmatmul.f32.vlgmr.msrb.gmra.mxu2 %v1383_v41  ;;  %v1707_v41 = vstv %s2014_s4 }
 0x1ac   : > { %1524 = vmatpush.msra.mxu0 %v3801_v51  ;;  %1564 = vmatpush.msra.mxu1 %v3281_v31 }
 0x1ad   : > { %1633 = vmatpush.msra.mxu2 %v3387_v6  ;;  %1674 = vmatpush.msra.mxu3 %v3297_v5 }
 0x1ae   : > { %1485 = vmatmul.f32.vlgmr.msrb.gmra.mxu3 %v3538_v0  ;;  %1527 = vmatpush.msra.mxu0 %v3802_v52 }
 0x1af   : > { %1566 = vmatpush.msra.mxu1 %v3297_v5  ;;  %1637 = vmatpush.msra.mxu2 %v3401_v37  ;;  %v1727_v5 = vand.u32 2147483648, %v3804_v1  ;;  %v1694_v37 = vld [vmem:[%s3806_s30] sm:$0x1] }
 0x1b0   : > { %1676 = vmatpush.msra.mxu3 %v3313_v16  ;;  %1530 = vmatpush.msra.mxu0 %v3803_v53 }
 0x1b1   : > { %1568 = vmatpush.msra.mxu1 %v3313_v16  ;;  %1641 = vmatpush.msra.mxu2 %v3416_v15  ;;  %v1718_v15 = vsub.f32 1.0, %v1717_v9  ;;  %v1725_v16 = vand.u32 2147483647, %v3804_v1  ;;  %v1728_v30 = vor.u32 1.1754944e-38, %v1727_v5 }
 0x1b2   : > { %1678 = vmatpush.msra.mxu3 %v3329_v23  ;;  %1533 = vmatpush.msra.mxu0 %v3390_v10 }
 0x1b3   : > { %1570 = vmatpush.msra.mxu1 %v3329_v23  ;;  %1645 = vmatpush.msra.mxu2 %v3427_v22  ;;  %v1719_v23 = vmul.f32 %v2200_v44, %v1718_v15  ;;  %vm1726_vm4 = vcmp.eq.f32.partialorder %v1725_v16, 8.507059e+37 }
 0x1b4   : > { %1680 = vmatpush.msra.mxu3 %v3353_v14  ;;  %1647 = vmatmul.f32.vlgmr.msra.gmra.mxu2 %v3538_v0 }
 0x1b5   : > { %1536 = vmatpush.msra.mxu0 %v3404_v43  ;;  %1572 = vmatpush.msra.mxu1 %v3353_v14  ;;  %v1720_v14 = vadd.f32 %v2200_v44, %v1719_v23 }
 0x1b6   : > { %1682 = vmatpush.msra.mxu3 %v3360_v38  ;;  %1539 = vmatmul.f32.vlgmr.msra.gmra.mxu0 %v1380_v26  ;;  %v1714_v26 = vld [vmem:[#allocation2] sm:$0xff] }
 0x1b7   : > { %1684 = vmatmul.f32.vlgmr.msra.gmra.mxu3 %v3538_v0  ;;  %1574 = vmatpush.msra.mxu1 %v3360_v38  ;;  %v1724_v49 = vsel %vm1723_vm3, %v2200_v44, %v1720_v14 }
 0x1b8   : > { %1578 = vmatmul.f32.vlgmr.msra.gmra.mxu1 %v1381_v28  ;;  %v1729_v61 = vsel %vm1726_vm4, %v1728_v30, %v1724_v49 }
 0x1b9   : > { %2024 = vpush %v1729_v61 }
 0x1ea   : > { %s2025_s6 = spop %2024 }
 0x1eb   : > { %s1731_s8 = smul.f32 6.0, %s2025_s6 }
 0x1ed   : > { %s1732_s24 = ssub.f32 1.0, %s1731_s8 }
 0x20c   : > { %v1043_v55 = vpop.f32.mrf.mxu0 }
 0x210   : > { %v1144_v58 = vpop.f32.mrf.mxu1  ;;  %v1198_v59 = vpop.f32.mrf.mxu2 }
 0x211   : > { %v1145_v31 = vadd.f32 %v1144_v58, %v1043_v55  ;;  %v1740_v58 = vstv %s1732_s24 }
 0x213   : > { %v1199_v46 = vadd.f32 %v1198_v59, %v1145_v31 }
 0x214   : > { %v1237_v63 = vpop.f32.mrf.mxu3 }
 0x215   : > { %v1238_v2 = vadd.f32 %v1237_v63, %v1199_v46 }
 0x217   : > { %v1306_v7 = vpop.f32.mrf.mxu0 }
 0x218   : > { %v1307_v32 = vadd.f32 %v1306_v7, %v1238_v2 }
 0x21a   : > { %v1343_v19 = vpop.f32.mrf.mxu1 }
 0x21b   : > { %v1344_v10 = vadd.f32 %v1343_v19, %v1307_v32 }
 0x22e   : > { %v1385_v27 = vpop.f32.mrf.mxu2 }
 0x22f   : > { %v1386_v33 = vadd.f32 %v1385_v27, %v1346_v13 }
 0x231   : > { %v1486_v48 = vpop.f32.mrf.mxu3 }
 0x232   : > { %v1487_v60 = vadd.f32 %v1486_v48, %v1386_v33 }
 0x233   : > { %v1540_v62 = vpop.f32.mrf.mxu0 }
 0x234   : > { %v1541_v8 = vadd.f32 %v1540_v62, %v1487_v60 }
 0x235   : > { %v1579_v45 = vpop.f32.mrf.mxu1 }
 0x236   : > { %v1580_v12 = vadd.f32 %v1579_v45, %v1541_v8 }
 0x237   : > { %v1648_v21 = vpop.f32.mrf.mxu2 }
 0x238   : > { %v1649_v22 = vadd.f32 %v1648_v21, %v1580_v12 }
 0x23a   : > { %v1685_v47 = vpop.f32.mrf.mxu3 }
 0x23b   : > { %v1686_v38 = vadd.f32 %v1685_v47, %v1649_v22 }
 0x23d   : > { %v1688_v57 = vmul.f32 1.442695, %v1686_v38  ;;  %vm1690_vm5 = vcmp.gt.f32.partialorder %v1686_v38, 0.0 }
 0x23f   : > { %2201 = vpow2.f32 %v1688_v57 }
 0x245   : > { %v2202_v6 = vpop.eup %2201 }
 0x246   : > { %v2016_v20 = vadd.f32 -1.0, %v2202_v6  ;;  %v1693_v43 = vmin.f32 %v2202_v6, 1.0 }
 0x248   : > { %v1692_v50 = vsel %vm1690_vm5, %v1686_v38, %v2016_v20  ;;  %v1709_v24 = vmul.f32 %v1693_v43, %v1344_v10 }
 0x249   : > { %v1696_v18 = vmul.f32 %v1694_v37, %v1692_v50  ;;  %v1703_v56 = vmul.f32 %v1695_v54, %v1692_v50 }
 0x24a   : > { %v1710_v34 = vmul.f32 %v1709_v24, %v1694_v37 }
 0x24b   : > { %v1698_v39 = vsel %vm1697_vm6, %v1696_v18, 0.0  ;;  %v1704_v3 = vsel %vm1697_vm6, %v1703_v56, 0.0 }
 0x24c   : > { %1699 = vadd.xlane.f32.xlu0 %v1698_v39  ;;  %v1711_v35 = vsel %vm1697_vm6, %v1710_v34, 0.0 }
 0x24d   : > { %1712 = vadd.xlane.f32.xlu1 %v1711_v35 }
 0x254   : > { %1705 = vadd.xlane.f32.xlu0 %v1704_v3 }
 0x2bf   : > { %v1700_v4 = vpop.xlane.xlu0 %1699 }
 0x2c0   : > { %v1702_v0 = vadd.f32 %v1701_v11, %v1700_v4  ;;  %v1713_v53 = vpop.xlane.xlu1 %1712 }
 0x2c2   : > { %v1737_v28 = vperm.slane %v1702_v0, 0 }
 0x2c4   : > { %v1738_v36 = vmul.f32 %v1737_v28, %v1714_v26 }
 0x2c6   : > { %v1739_v42 = vsub.f32 %v1736_v29, %v1738_v36 }
 0x2c7   : > { %v1706_v51 = vpop.xlane.xlu0 %1705 }
 0x2c8   : > { %1746 = vst [vmem:[%s595_s11] sm:$0xff] %v1739_v42  ;;  %v1708_v52 = vadd.f32 %v1707_v41, %v1706_v51  ;;  %v1741_v63 = vmul.f32 %v1740_v58, %v1739_v42 }
 0x2ca   : > { %v1742_v55 = vsub.f32 %v1713_v53, %v1708_v52 }
 0x2cc   : > { %v1743_v59 = vperm.slane %v1742_v55, 0 }
 0x2ce   : > { %v1744_v1 = vmul.f32 %v1743_v59, %v1714_v26 }
 0x2d0   : > { %v1745_v7 = vadd.f32 %v1744_v1, %v1741_v63 }
 0x2d2   : > { %1747 = vst [vmem:[%s602_s10] sm:$0xff] %v1745_v7 }
 0x2d3 PF: > { %s3808_s12 = sld [smem:[#allocation26_spill]]  ;;  %s1766_s13 = sshll.u32 %s595_s11, 4  ;;  %s1767_s13 = int_to_ptr.vmem [resolvable:$true] %s1766_s13 }
 0x2d4   : > { %s3810_s3 = sld [smem:[#allocation52_spill]]  ;;  %s1749_s5 = scalar_lea.sflag [#allocation5], %s2911_s2 }
 0x2d9   : > { %s2019_s19 = sshll.u32 %s3808_s12, 3 }
 0x2da   : > { %s1764_s9 = scalar_lea.hbm %s3810_s3, %s2019_s19  ;;  %s2388_s15 = scalar_lea.hbm %s3810_s3, 16 }
 0x2db   : > { %s1768_s20 = sshll.u32 %s1764_s9, 4  ;;  %s1769_s20 = int_to_ptr.hbm [resolvable:$true] %s1768_s20 }
 0x2dc   : > { %s2382_s30 = sshra.s32 %s1769_s20, 4  ;;  %s2383_s30 = int_to_ptr.hbm [resolvable:$true] %s2382_s30 }
 0x2dd   : > { %s2384_s7 = scalar_lea.hbm %s2383_s30, 8  ;;  %p2389_p13 = scmp.lt.s32.totalorder %s2383_s30, %s3810_s3 }
 0x2de   : > { %p2385_p6 = scmp.ne.s32.totalorder %s2383_s30, %s2384_s7  ;;  %p2390_p5 = scmp.lt.s32.totalorder %s2388_s15, %s2384_s7 }
 0x2e0   : > { %p2386_p10 = pnand %p2385_p6, %p2767_p11  ;;  %p2391_p7 = por %p2390_p5, %p2389_p13 }
 0x2e2   : > { %p2387_p12 = pneg %p2386_p10 }
 0x2e4   : > { %p2392_p9 = pnand %p2391_p7, %p2387_p12 }
 0x2e6   : > { %2395 = shalt.err (!%p2392_p9)
}
 0x2e7   : > { %2042 = dma.vmem_to_hbm [thread:$0]  (%p2767_p11), %s1767_s13, 128, %s1769_s20, %s1749_s5  }
 0x2e8   : > { %s3811_s24 = sld [smem:[#allocation53_spill]]  ;;  %s1780_s29 = sshll.u32 %s602_s10, 4  ;;  %s1781_s29 = int_to_ptr.vmem [resolvable:$true] %s1780_s29 }
 0x2e9   : > { %s1754_s30 = scalar_lea.sflag [#allocation16], %s2911_s2 }
 0x2ee   : > { %s3812_s12 = smov %s3811_s24  ;;  %s1778_s27 = scalar_lea.hbm %s3811_s24, %s2019_s19 }
 0x2ef   : > { %s1782_s9 = sshll.u32 %s1778_s27, 4  ;;  %s2416_s13 = scalar_lea.hbm %s3812_s12, 16  ;;  %s1783_s9 = int_to_ptr.hbm [resolvable:$true] %s1782_s9 }
 0x2f0   : > { %s2410_s7 = sshra.s32 %s1783_s9, 4  ;;  %s2411_s7 = int_to_ptr.hbm [resolvable:$true] %s2410_s7 }
 0x2f1   : > { %s2412_s1 = scalar_lea.hbm %s2411_s7, 8  ;;  %p2417_p4 = scmp.lt.s32.totalorder %s2411_s7, %s3812_s12 }
 0x2f2   : > { %p2413_p8 = scmp.ne.s32.totalorder %s2411_s7, %s2412_s1  ;;  %p2418_p3 = scmp.lt.s32.totalorder %s2416_s13, %s2412_s1 }
 0x2f4   : > { %p2414_p2 = pnand %p2413_p8, %p2767_p11  ;;  %p2419_p6 = por %p2418_p3, %p2417_p4 }
 0x2f6   : > { %p2415_p0 = pneg %p2414_p2 }
 0x2f8   : > { %p2420_p10 = pnand %p2419_p6, %p2415_p0 }
 0x2fa   : > { %2423 = shalt.err (!%p2420_p10)
}
 0x2fb   : > { %2043 = dma.vmem_to_hbm [thread:$0]  (%p2767_p11), %s1781_s29, 128, %s1783_s9, %s1754_s30  }
 0x2fc PF: > { %p2078_p12 = scmp.ge.s32.totalorder %s2562_s16, 2  ;;  %s1794_s18 = sand.u32 1, %s2510_s21  }
 0x2fd   : > { %s1795_s10 = scalar_lea.sflag [#allocation5], %s1794_s18 }
 0x2fe   : > { %p2067_p13 = pnand %p2078_p12, %p2777_p1 }
 0x300   : > { %p2068_p5 = pneg %p2067_p13 }
 0x302   : > { %2501 = dma.done.wait (%p2068_p5), %s1795_s10, 128  }
 0x303   : > { %2503 = vsyncadd (%p2068_p5), %s1795_s10, 4294967168  ;;  %s1805_s19 = scalar_lea.sflag [#allocation16], %s1794_s18 }
 0x304   : > { %2505 = dma.done.wait (%p2068_p5), %s1805_s19, 128  }
 0x305   : > { %2507 = vsyncadd (%p2068_p5), %s1805_s19, 4294967168  ;;  %s37_s16 = sadd.s32 1, %s2562_s16   ;;  %s3815_s4 = sld [smem:[#allocation32_spill]] }
 0x306   : > { %p3663_p7 = scmp.ge.s32.totalorder %s37_s16, 6   ;;  %s3816_s6 = sld [smem:[#allocation34_spill]] }
 0x307   : > { %s3817_s11 = sld [smem:[#allocation24_spill]]  ;;  %s3822_s21 = smov %s2514_s22 }
 0x308   : > { %s3818_s29 = sld [smem:[#allocation33_spill]]  ;;  %s3823_s22 = smov %s2518_s23 }
 0x309   : > { %s3819_s13 = sld [smem:[#allocation27_spill]]  ;;  %s3825_s24 = smov %s2526_s25 }
 0x30a   : > { %s3820_s8 = sld [smem:[#allocation28_spill]]  ;;  %s3826_s25 = smov %s2530_s26 }
 0x30b   : > { %s3821_s15 = sld [smem:[#allocation29_spill]]  ;;  %s3824_s23 = smov %s3815_s4 }
 0x30c   : > { %s3827_s26 = smov %s3816_s6  ;;  %s3828_s27 = smov %s2538_s28 }
 0x30d   : > { %s3829_s28 = smov %s3817_s11  ;;  %s3830_s30 = smov %s2554_s14 }
 0x30e   :  { %36 = sbr.rel (!%p3663_p7) target bundleno = 30 (0x1e), region = 179 }
 0x310   : > { %s3831_s14 = smov %s3820_s8 }
 0x313   :  { %1811 = vsyncpa [#allocation4], 1 }
 0x314   :  { %1813 = vsyncpa [#allocation4 + $0x1], 1 }
 0x315   :  { %1814 = vsyncpa [#allocation9], 1 }
 0x316   :  { %1816 = vsyncpa [#allocation9 + $0x1], 1 }
 0x317   :  { %1817 = vsyncpa [#allocation12], 1 }
 0x318   :  { %1819 = vsyncpa [#allocation12 + $0x1], 1 }
 0x319   :  { %1820 = vsyncpa [#allocation5], 1 }
 0x31a   :  { %1822 = vsyncpa [#allocation5 + $0x1], 1 }
 0x31b   :  { %1823 = vsyncpa [#allocation16], 1 }
 0x31c   :  { %1825 = vsyncpa [#allocation16 + $0x1], 1 }
 0x31d   :  { %1826 = vsyncpa [#allocation6], 1 }
 0x31e   :  { %1828 = vsyncpa [#allocation6 + $0x1], 1 }

</bundles_post_ra>
